<compile_context>
chip_gen: v7x
topology: tpu7x:2x2x1
jax: 0.10.0
libtpu: 0.0.40
codegen_flags: <defaults>
</compile_context>

<pallas_src>
import jax
import jax.numpy as jnp
from jax.experimental import pallas as pl
from jax.experimental.pallas import tpu as pltpu


def _scatter_kernel(st_ref, nb_ref, key_ref, featT_ref, out_ref):
    # st_ref, nb_ref: SMEM (batch*num_j,) int32 -- first pillar block / #blocks per tile
    # key_ref:   (P_BLK, 1) int32               -- fused batch*S_pad + lin keys (sorted)
    # featT_ref: (C, P_BLK) float               -- pre-transposed pillar features
    # out_ref:   (1, C, TS)                     -- one spatial tile of one batch element
    b = pl.program_id(0)
    j = pl.program_id(1)
    k = pl.program_id(2)
    num_j = pl.num_programs(1)
    P_BLK = featT_ref.shape[1]
    TS = out_ref.shape[-1]

    idx = b * num_j + j
    nblk = nb_ref[idx]

    # k == 0 always runs (also zero-fills empty tiles: no key matches -> zeros);
    # k > 0 only runs when the tile's pillar run spills into the k-th block.
    @pl.when(k < jnp.maximum(nblk, 1))
    def _():
        # subtract the scalar tile base from the (P_BLK, 1) key column instead of
        # adding it to the (P_BLK, TS) iota: one compare per one-hot element.
        local_key = key_ref[...] - idx * TS                           # (P_BLK, 1)
        s_ids = jax.lax.broadcasted_iota(jnp.int32, (P_BLK, TS), 1)
        onehot = (local_key == s_ids).astype(featT_ref.dtype)         # (P_BLK, TS)

        # lane-dense (C, P_BLK) @ (P_BLK, TS) -> (C, TS) on the MXU
        contrib = jax.lax.dot_general(
            featT_ref[...], onehot,
            dimension_numbers=(((1,), (0,)), ((), ())),
            preferred_element_type=jnp.float32,
        )

        @pl.when(k == 0)
        def _():
            out_ref[0, :, :] = contrib.astype(out_ref.dtype)

        @pl.when(k > 0)
        def _():
            out_ref[0, :, :] += contrib.astype(out_ref.dtype)


def pointpillar_scatter3d(pillar_features, coords, *, nx, ny, nz,
                          batch_size, num_bev_features,
                          tile_s=1024, pillar_blk=256):
    """pillar_features: (P, C) float; coords: (P, 4) int [b, z, y, x].

    Returns (batch, num_bev_features, ny, nx), matching torch's view of the
    dense scatter.  Rows with batch id outside [0, batch_size) are ignored.
    """
    P, C = pillar_features.shape
    assert C == num_bev_features // nz
    S = nz * ny * nx
    dtype = pillar_features.dtype

    # ---- spatial tile: prefer a lane-dense divisor of S (S_pad == S, no slice) ----
    if S <= tile_s:
        TS = S
    else:
        TS = 0
        t = (min(tile_s, S) // 128) * 128
        while t >= 128:
            if S % t == 0:
                TS = t
                break
            t -= 128
        if TS == 0:  # no lane-dense divisor: pad and slice back at the end
            TS = max(128, (min(tile_s, S) // 128) * 128)
    num_j = pl.cdiv(S, TS)
    S_pad = num_j * TS

    # ---- pillar blocks (decoupled from TS) ----
    P_BLK = max(128, (pillar_blk // 128) * 128)
    # worst case (unique coords per batch): a tile's contiguous pillar run has
    # length <= TS and can straddle at most this many P_BLK-sized blocks.
    num_k = pl.cdiv(TS, P_BLK) + 1
    n_blocks = pl.cdiv(P, P_BLK)
    P_padded = n_blocks * P_BLK

    assert batch_size * S_pad < 2**31, "fused int32 key would overflow"

    bid = coords[:, 0].astype(jnp.int32)
    lin = (coords[:, 1] * (ny * nx) + coords[:, 2] * nx
           + coords[:, 3]).astype(jnp.int32)

    # fused key; invalid / padded pillar rows get an out-of-range sentinel
    sentinel = jnp.int32(batch_size * S_pad)
    valid = jnp.logical_and(bid >= 0, bid < batch_size)
    key = jnp.where(valid, bid * S_pad + lin, sentinel)

    # sort pillars by key (tile runs become contiguous), pad to whole blocks,
    # and pre-transpose features so the kernel LHS is lane-dense (C, P_BLK).
    order = jnp.argsort(key)
    skey = jnp.pad(key[order], (0, P_padded - P), constant_values=sentinel)
    sfeatT = jnp.pad(pillar_features[order].T, ((0, 0), (0, P_padded - P)))

    # per-(batch, tile) first pillar block and #blocks (flat 1-D, scalar-prefetched)
    tile_lo = jnp.arange(batch_size * num_j, dtype=jnp.int32) * TS
    start_idx = jnp.searchsorted(skey, tile_lo, side='left').astype(jnp.int32)
    end_idx = jnp.searchsorted(skey, tile_lo + TS, side='left').astype(jnp.int32)
    start_blk = jnp.minimum(start_idx // P_BLK, n_blocks - 1).astype(jnp.int32)
    nblk = jnp.where(end_idx > start_idx,
                     (end_idx - 1) // P_BLK - start_blk + 1, 0)
    nblk = jnp.minimum(nblk, num_k).astype(jnp.int32)

    def _pillar_blk(b, j, k, st, nb):
        idx = b * num_j + j
        # clamp gated-off k steps to the previously used block so the DMA is skipped
        off = jnp.minimum(k, jnp.maximum(nb[idx] - 1, 0))
        return st[idx] + off

    out = pl.pallas_call(
        _scatter_kernel,
        out_shape=jax.ShapeDtypeStruct((batch_size, C, S_pad), dtype),
        grid_spec=pltpu.PrefetchScalarGridSpec(
            num_scalar_prefetch=2,
            grid=(batch_size, num_j, num_k),
            in_specs=[
                pl.BlockSpec((P_BLK, 1),
                             lambda b, j, k, st, nb: (_pillar_blk(b, j, k, st, nb), 0)),
                pl.BlockSpec((C, P_BLK),
                             lambda b, j, k, st, nb: (0, _pillar_blk(b, j, k, st, nb))),
            ],
            out_specs=pl.BlockSpec((1, C, TS), lambda b, j, k, st, nb: (b, 0, j)),
        ),
        compiler_params=pltpu.CompilerParams(
            dimension_semantics=("parallel", "parallel", "arbitrary"),
            vmem_limit_bytes=32 * 1024 * 1024),
    )(start_blk, nblk, skey.reshape(P_padded, 1), sfeatT)

    if S_pad != S:
        out = out[:, :, :S]
    # identical to torch: view(batch, C*nz, ny, nx)
    return out.reshape(batch_size, C * nz, ny, nx)


if __name__ == "__main__":
    key = jax.random.PRNGKey(0)

    # model_cfg.INPUT_SHAPE = (nx, ny, nz), NUM_BEV_FEATURES = 64
    nx, ny, nz = 32, 32, 2
    num_bev_features = 64
    C = num_bev_features // nz            # 32 features before compression
    batch_size = 2
    per_batch = 48
    S = nz * ny * nx                      # 2048 -> 2 spatial tiles of 1024

    k1, k2, k3 = jax.random.split(key, 3)
    n_valid = batch_size * per_batch
    n_padrow = 8                          # fake padded pillar rows (bid = -1)
    P = n_valid + n_padrow

    pillar_features = jax.random.normal(k1, (P, C), dtype=jnp.float32)

    # deterministic, unique voxel coords per batch element
    lin0 = jax.random.permutation(k2, S)[:per_batch].astype(jnp.int32)
    lin1 = jax.random.permutation(k3, S)[:per_batch].astype(jnp.int32)
    lins = jnp.concatenate([lin0, lin1])
    bids = jnp.concatenate([jnp.zeros(per_batch, jnp.int32),
                            jnp.ones(per_batch, jnp.int32)])
    z = (lins // (ny * nx)).astype(jnp.int32)
    rem = lins % (ny * nx)
    y = (rem // nx).astype(jnp.int32)
    x = (rem % nx).astype(jnp.int32)
    coords_valid = jnp.stack([bids, z, y, x], axis=1)            # (n_valid, 4)
    # padding rows: batch id -1 -> must be ignored by the kernel
    coords_pad = jnp.concatenate(
        [jnp.full((n_padrow, 1), -1, jnp.int32),
         jnp.zeros((n_padrow, 3), jnp.int32)], axis=1)
    coords = jnp.concatenate([coords_valid, coords_pad], axis=0)  # (P, 4)

    out = pointpillar_scatter3d(
        pillar_features, coords, nx=nx, ny=ny, nz=nz,
        batch_size=batch_size, num_bev_features=num_bev_features)
    out = jax.block_until_ready(out)

    # pure-JAX reference of the PyTorch scatter (valid pillars only)
    ref = jnp.zeros((batch_size, C, S), jnp.float32)
    ref = ref.at[bids, :, lins].set(pillar_features[:n_valid])
    ref = ref.reshape(batch_size, C * nz, ny, nx)

    assert out.shape == (batch_size, num_bev_features, ny, nx)
    assert jnp.allclose(out, ref, atol=1e-5, rtol=1e-5)
    print("KERNEL_OK")
</pallas_src>

<mosaic_0001>
module attributes {stable_mosaic.version = 11 : i64} {
  func.func @_scatter_kernel(%arg0: i32, %arg1: i32, %arg2: i32, %arg3: memref<4xi32, #tpu.memory_space<smem>>, %arg4: memref<4xi32, #tpu.memory_space<smem>>, %arg5: memref<256x1xi32, #tpu.memory_space<vmem>>, %arg6: memref<32x256xf32, #tpu.memory_space<vmem>>, %arg7: memref<1x32x1024xf32, #tpu.memory_space<vmem>>) attributes {dimension_semantics = [#tpu.dimension_semantics<parallel>, #tpu.dimension_semantics<parallel>, #tpu.dimension_semantics<arbitrary>], iteration_bounds = array<i64: 2, 2, 5>, scalar_prefetch = 2 : i64, scratch_operands = 0 : i64, tpu.core_type = #tpu.core_type<tc>, window_params = [{transform_indices = @transform_0, window_bounds = array<i64: 256, 1>}, {transform_indices = @transform_1, window_bounds = array<i64: 32, 256>}, {transform_indices = @transform_2, window_bounds = array<i64: 1, 32, 1024>}]} {
    %c2_i32 = arith.constant 2 : i32
    %0 = arith.muli %arg0, %c2_i32 : i32
    %1 = arith.addi %0, %arg1 : i32
    %2 = arith.index_cast %1 : i32 to index
    %3 = memref.load %arg4[%2] : memref<4xi32, #tpu.memory_space<smem>>
    %c1_i32 = arith.constant 1 : i32
    %4 = arith.maxsi %3, %c1_i32 : i32
    %5 = arith.cmpi slt, %arg2, %4 : i32
    %6 = arith.extui %5 : i1 to i32
    %c0_i32 = arith.constant 0 : i32
    %7 = arith.cmpi ne, %6, %c0_i32 : i32
    scf.if %7 {
      %c0 = arith.constant 0 : index
      %c0_0 = arith.constant 0 : index
      %8 = vector.load %arg5[%c0, %c0_0] : memref<256x1xi32, #tpu.memory_space<vmem>>, vector<256x1xi32>
      %c1024_i32 = arith.constant 1024 : i32
      %9 = arith.muli %1, %c1024_i32 : i32
      %10 = vector.broadcast %9 : i32 to vector<256x1xi32>
      %11 = arith.subi %8, %10 : vector<256x1xi32>
      %12 = tpu.iota {dimensions = array<i32: 1>} : vector<256x1024xi32>
      %13 = vector.broadcast %11 : vector<256x1xi32> to vector<256x1024xi32>
      %14 = arith.cmpi eq, %13, %12 : vector<256x1024xi32>
      %15 = arith.extui %14 : vector<256x1024xi1> to vector<256x1024xi32>
      %16 = arith.sitofp %15 : vector<256x1024xi32> to vector<256x1024xf32>
      %c0_1 = arith.constant 0 : index
      %c0_2 = arith.constant 0 : index
      %17 = vector.load %arg6[%c0_1, %c0_2] : memref<32x256xf32, #tpu.memory_space<vmem>>, vector<32x256xf32>
      %cst = arith.constant dense<0.000000e+00> : vector<32x1024xf32>
      %18 = tpu.matmul %17, %16, %cst {dimension_numbers = #tpu.dot_dimension_numbers<[1], [0], [0], [1], [0, 0, 1, 1], [], []>} : vector<32x256xf32>, vector<256x1024xf32>, vector<32x1024xf32> -> vector<32x1024xf32>
      %c0_i32_3 = arith.constant 0 : i32
      %19 = arith.cmpi eq, %arg2, %c0_i32_3 : i32
      %20 = arith.extui %19 : i1 to i32
      %c0_i32_4 = arith.constant 0 : i32
      %21 = arith.cmpi ne, %20, %c0_i32_4 : i32
      scf.if %21 {
        %c0_7 = arith.constant 0 : index
        %c0_8 = arith.constant 0 : index
        %c0_9 = arith.constant 0 : index
        %25 = vector.load %arg7[%c0_7, %c0_8, %c0_9] : memref<1x32x1024xf32, #tpu.memory_space<vmem>>, vector<1x32x1024xf32>
        %26 = vector.shape_cast %25 : vector<1x32x1024xf32> to vector<32x1024xf32>
        %27 = vector.shape_cast %18 : vector<32x1024xf32> to vector<1x32x1024xf32>
        tpu.vector_store %arg7[%c0_7, %c0_8, %c0_9], %27 {strides = array<i32>} : memref<1x32x1024xf32, #tpu.memory_space<vmem>>, vector<1x32x1024xf32>,
      } else {
      }
      %c0_i32_5 = arith.constant 0 : i32
      %22 = arith.cmpi sgt, %arg2, %c0_i32_5 : i32
      %23 = arith.extui %22 : i1 to i32
      %c0_i32_6 = arith.constant 0 : i32
      %24 = arith.cmpi ne, %23, %c0_i32_6 : i32
      scf.if %24 {
        %c0_7 = arith.constant 0 : index
        %c0_8 = arith.constant 0 : index
        %c0_9 = arith.constant 0 : index
        %25 = vector.load %arg7[%c0_7, %c0_8, %c0_9] : memref<1x32x1024xf32, #tpu.memory_space<vmem>>, vector<1x32x1024xf32>
        %26 = vector.shape_cast %25 : vector<1x32x1024xf32> to vector<32x1024xf32>
        %27 = arith.addf %26, %18 : vector<32x1024xf32>
        %c0_10 = arith.constant 0 : index
        %c0_11 = arith.constant 0 : index
        %c0_12 = arith.constant 0 : index
        %28 = vector.load %arg7[%c0_10, %c0_11, %c0_12] : memref<1x32x1024xf32, #tpu.memory_space<vmem>>, vector<1x32x1024xf32>
        %29 = vector.shape_cast %28 : vector<1x32x1024xf32> to vector<32x1024xf32>
        %30 = vector.shape_cast %27 : vector<32x1024xf32> to vector<1x32x1024xf32>
        tpu.vector_store %arg7[%c0_10, %c0_11, %c0_12], %30 {strides = array<i32>} : memref<1x32x1024xf32, #tpu.memory_space<vmem>>, vector<1x32x1024xf32>,
      } else {
      }
    } else {
    }
    return
  }
  func.func @transform_0(%arg0: i32, %arg1: i32, %arg2: i32, %arg3: memref<4xi32, #tpu.memory_space<smem>>, %arg4: memref<4xi32, #tpu.memory_space<smem>>) -> (i32, i32) {
    %c2_i32 = arith.constant 2 : i32
    %0 = arith.muli %arg0, %c2_i32 : i32
    %1 = arith.addi %0, %arg1 : i32
    %2 = arith.index_cast %1 : i32 to index
    %3 = memref.load %arg4[%2] : memref<4xi32, #tpu.memory_space<smem>>
    %c1_i32 = arith.constant 1 : i32
    %4 = arith.subi %3, %c1_i32 : i32
    %c0_i32 = arith.constant 0 : i32
    %5 = arith.maxsi %4, %c0_i32 : i32
    %6 = arith.minsi %arg2, %5 : i32
    %7 = arith.index_cast %1 : i32 to index
    %8 = memref.load %arg3[%7] : memref<4xi32, #tpu.memory_space<smem>>
    %9 = arith.addi %8, %6 : i32
    %c0_i32_0 = arith.constant 0 : i32
    %c0_i32_1 = arith.constant 0 : i32
    return %9, %c0_i32_0 : i32, i32
  }
  func.func @transform_1(%arg0: i32, %arg1: i32, %arg2: i32, %arg3: memref<4xi32, #tpu.memory_space<smem>>, %arg4: memref<4xi32, #tpu.memory_space<smem>>) -> (i32, i32) {
    %c2_i32 = arith.constant 2 : i32
    %0 = arith.muli %arg0, %c2_i32 : i32
    %1 = arith.addi %0, %arg1 : i32
    %2 = arith.index_cast %1 : i32 to index
    %3 = memref.load %arg4[%2] : memref<4xi32, #tpu.memory_space<smem>>
    %c1_i32 = arith.constant 1 : i32
    %4 = arith.subi %3, %c1_i32 : i32
    %c0_i32 = arith.constant 0 : i32
    %5 = arith.maxsi %4, %c0_i32 : i32
    %6 = arith.minsi %arg2, %5 : i32
    %7 = arith.index_cast %1 : i32 to index
    %8 = memref.load %arg3[%7] : memref<4xi32, #tpu.memory_space<smem>>
    %9 = arith.addi %8, %6 : i32
    %c0_i32_0 = arith.constant 0 : i32
    %c0_i32_1 = arith.constant 0 : i32
    return %c0_i32_0, %9 : i32, i32
  }
  func.func @transform_2(%arg0: i32, %arg1: i32, %arg2: i32, %arg3: memref<4xi32, #tpu.memory_space<smem>>, %arg4: memref<4xi32, #tpu.memory_space<smem>>) -> (i32, i32, i32) {
    %c0_i32 = arith.constant 0 : i32
    %c0_i32_0 = arith.constant 0 : i32
    return %arg0, %c0_i32, %arg1 : i32, i32, i32
  }
}

</mosaic_0001>

<bundles_post_ra>
// kernel: tpu_custom_call.1
= control target key start
LH: loop header
LB: loop body
LE: loop exit
PB: predicated region body
PF: predicated region fallthrough
CT: control target
= control target key end

     0   :  { %s4279_s0 = inlined_call_operand.vmem [shape: s32[4], index: 0, kind: input, shape index: {}]   ;;  %s4280_s2 = inlined_call_operand.vmem [shape: s32[256,1], index: 2, kind: input, shape index: {}]   ;;  %s4281_s3 = inlined_call_operand.vmem [shape: f32[32,256], index: 3, kind: input, shape index: {}]   ;;  %s4282_s4 = inlined_call_operand.hbm [shape: f32[2,32,2048], index: 4, kind: output, shape index: {}]   ;;  %s4283_s1 = inlined_call_operand.vmem [shape: s32[4], index: 1, kind: input, shape index: {}]  }
   0x1   :  { %s9_s17 = sshll.u32 %s4279_s0, 4  ;;  %s13_s20 = sshll.u32 %s4283_s1, 4  ;;  %s10_s17 = int_to_ptr.vmem [resolvable:$true] %s9_s17  ;;  %s14_s20 = int_to_ptr.vmem [resolvable:$true] %s13_s20 }
   0x2   :  { %s2795_s21 = scalar_lea.vmem %s10_s17, 16  ;;  %p2800_p1 = scmp.lt.s32.totalorder %s10_s17, %s10_s17 }
   0x3   :  { %p2796_p0 = scmp.ne.s32.totalorder %s10_s17, %s2795_s21  ;;  %p2801_p2 = scmp.lt.s32.totalorder %s2795_s21, %s2795_s21 }
   0x5   :  { %p2802_p3 = por %p2801_p2, %p2800_p1 }
   0x7   :  { %p2803_p4 = pnand %p2802_p3, %p2796_p0 }
   0x9   :  { %2806 = shalt.err (!%p2803_p4)  }
   0xa   :  { %s2933_s22 = smov [#allocation3]   ;;  %s2807_s23 = scalar_lea.vmem %s14_s20, 16 }
   0xb   :  { %12 = dma.vmem_to_smem %s10_s17, 16, %s2933_s22, [#allocation2] }
   0xc   :  { %p2808_p5 = scmp.ne.s32.totalorder %s14_s20, %s2807_s23  ;;  %p2812_p6 = scmp.lt.s32.totalorder %s14_s20, %s14_s20 }
   0xd   :  { %p2813_p7 = scmp.lt.s32.totalorder %s2807_s23, %s2807_s23 }
   0xf   :  { %p2814_p8 = por %p2813_p7, %p2812_p6 }
  0x11   :  { %p2815_p9 = pnand %p2814_p8, %p2808_p5 }
  0x13   :  { %2818 = shalt.err (!%p2815_p9)  }
  0x14   :  { %s2934_s0 = smov [#allocation4]  }
  0x15   :  { %16 = dma.vmem_to_smem %s14_s20, 16, %s2934_s0, [#allocation2] }
  0x16   :  { %2887 = dma.done.wait [#allocation2], 32 }
  0x17   :  { %2888 = vsyncadd [#allocation2], 4294967264 }
  0x18   :  { %18 = sfence }
  0x19   :  { %19 = vsyncpa [#allocation6], 0 }
  0x1a   :  { %21 = vsyncpa [#allocation6 + $0x1], 0  ;;  %s2972_s1 = smov 0   ;;  %s2974_s24 = smov 0  }
  0x1b   :  { %s2976_s25 = smov 0   ;;  %s2978_s26 = smov 0  }
  0x1c   :  { %s2980_s27 = smov 0   ;;  %s2982_s28 = smov 0  }
  0x1d   :  { %s2984_s29 = smov 0   ;;  %s2986_s30 = smov 0  }
  0x1e   :  { %s2988_s5 = smov 0   ;;  %s2990_s6 = smov 0  }
  0x1f LB: > { %4290 = sst [smem:[#allocation9_spill]] %s2919_s29  ;;  %s1898_s7 = sadd.s32 4294967295, %s2931_s6   ;;  %s2931_s6 = sphi %s2990_s6, %s27_s6   ;;  %s2927_s5 = sphi %s2988_s5, %s4306_s5   ;;  %s2923_s30 = sphi %s2986_s30, %s4305_s30   ;;  %s2919_s29 = sphi %s2984_s29, %s4304_s29   ;;  %s2915_s28 = sphi %s2982_s28, %s4303_s28   ;;  %s2911_s27 = sphi %s2980_s27, %s4302_s27   ;;  %s2907_s26 = sphi %s2978_s26, %s4301_s26   ;;  %s2903_s25 = sphi %s2976_s25, %s4309_s25   ;;  %s2899_s24 = sphi %s2974_s24, %s4308_s24   ;;  %s2895_s1 = sphi %s2972_s1, %s4307_s1  }
  0x20   : > { %4291 = sst [smem:[#allocation10_spill]] %s2923_s30  ;;  %s1899_s8 = sadd.s32 4294967294, %s2931_s6  }
  0x21   : > { %4292 = sst [smem:[#allocation11_spill]] %s2927_s5  ;;  %s39_s9 = sadd.s32 1, %s2919_s29 }
  0x22   : > { %p40_p10 = scmp.ge.s32.totalorder %s39_s9, 5  ;;  %s42_s10 = sadd.s32 1, %s2923_s30 }
  0x23   : > { %s46_s11 = sadd.s32 1, %s2927_s5  ;;  %p157_p11 = scmp.ne.s32.totalorder %s2903_s25, %s2899_s24 }
  0x24   : > { %s4311_s9 = smov (%p40_p10, %s39_s9), 0  ;;  %s4313_s10 = smov (!%p40_p10, %s42_s10), %s2923_s30 }
  0x25   : > { %4293 = sst [smem:[#allocation12_spill]] %s4311_s9  ;;  %p158_p12 = scmp.eq.s32.totalorder %s1898_s7, 19 }
  0x26   : > { %p163_p13 = scmp.ne.s32.totalorder %s2899_s24, %s2895_s1  ;;  %p44_p0 = scmp.ge.s32.totalorder %s4313_s10, 2 }
  0x27   : > { %p164_p1 = scmp.eq.s32.totalorder %s1899_s8, 19  ;;  %p3034_p2 = por %p158_p12, %p157_p11 }
  0x28   : > { %s4315_s10 = smov (%p44_p0, %s4313_s10), 0  ;;  %s4317_s11 = smov (!%p44_p0, %s46_s11), %s2927_s5 }
  0x29   : > { %4295 = sst [smem:[#allocation13_spill]] %s4315_s10  ;;  %p3041_p3 = por %p164_p1, %p163_p13 }
  0x2a   : > { %p1910_p4 = scmp.ge.s32.totalorder %s2931_s6, 1  ;;  %p48_p5 = scmp.ge.s32.totalorder %s4317_s11, 2 }
  0x2b   : > { %p240_p6 = scmp.lt.s32.totalorder %s2931_s6, 21  ;;  %s143_s14 = ssub.s32 %s2923_s30, %s4315_s10 }
  0x2c   : > { %s4319_s11 = smov (%p48_p5, %s4317_s11), 0  ;;  %s147_s17 = sadd.s32 1, %s2903_s25 }
  0x2d   : > { %4297 = sst [smem:[#allocation14_spill]] %s4319_s11  ;;  %p241_p7 = pnand %p1910_p4, %p240_p6 }
  0x2e   : > { %s142_s15 = ssub.s32 %s2927_s5, %s4319_s11  ;;  %s4284_s19 = sand.u32 (!%p241_p7), 1, %s2899_s24  }
  0x2f   : > { %s144_s16 = sor.u32 %s143_s14, %s142_s15  ;;  %244 = sbr.rel (%p241_p7) target bundleno = 616 (0x268), region = 28 }
  0x30   : > { %p145_p8 = scmp.eq.s32.totalorder %s144_s16, 0  ;;  %s1912_s20 = sshll.u32 (!%p241_p7), %s2915_s28, 1 }
  0x31   : > { %s3061_s21 = sshll.u32 (!%p241_p7), %s4284_s19, 8  ;;  %s3064_s22 = sadd.s32 (!%p241_p7), %s2911_s27, %s1912_s20 }
  0x32   : > { %s3055_s18 = scalar_select %p145_p8, %s2903_s25, %s147_s17  }
  0x33   : > { %s289_s23 = sld [smem:[#allocation4 + %s3064_s22]] (!%p241_p7) }
  0x34   : > { %4298 = sst [smem:[#allocation15_spill]] %s3055_s18 }
  0x35   : > { %s315_s0 = sld [smem:[#allocation4 + %s3064_s22]] (!%p241_p7) }
  0x36   : > { %s295_s7 = sld [smem:[#allocation3 + %s3064_s22]] }
  0x37   : > { %s321_s14 = sld [smem:[#allocation3 + %s3064_s22]] }
  0x38   : > { %s342_s16 = sld [smem:[#allocation4 + %s3064_s22]] }
  0x39   : > { %s1913_s8 = sadd.s32 4294967295, %s289_s23 }
  0x3a   : > { %p291_p9 = scmp.gt.s32.totalorder %s1913_s8, 0 }
  0x3b   : > { %s1917_s15 = sadd.s32 4294967295, %s315_s0 }
  0x3c   : > { %p317_p10 = scmp.gt.s32.totalorder %s1917_s15, 0  ;;  %s4321_s8 = smov (!%p291_p9, %s1913_s8), 0 }
  0x3d   : > { %p293_p11 = scmp.lt.s32.totalorder %s2907_s26, %s4321_s8 }
  0x3e   : > { %s4323_s15 = smov (!%p317_p10, %s1917_s15), 0  ;;  %p343_p1 = scmp.gt.s32.totalorder %s342_s16, 1 }
  0x3f   : > { %p319_p12 = scmp.lt.s32.totalorder %s2907_s26, %s4323_s15 }
  0x40   : > { %s294_s17 = scalar_select %p293_p11, %s2907_s26, %s4321_s8 }
  0x41   : > { %s320_s20 = scalar_select %p319_p12, %s2907_s26, %s4323_s15 }
  0x42   : > { %s296_s19 = sadd.s32 %s295_s7, %s294_s17  ;;  %s4329_s16 = smov (!%p343_p1, %s342_s16), 1 }
  0x43   : > { %s1914_s11 = sshll.u32 %s296_s19, 5  ;;  %s322_s10 = sadd.s32 %s321_s14, %s320_s20 }
  0x44   : > { %p298_p13 = scmp.lt.s32.totalorder %s1914_s11, 31  ;;  %s1918_s9 = sshll.u32 %s322_s10, 1 }
  0x45   : > { %p324_p0 = scmp.lt.s32.totalorder %s1918_s9, 1  ;;  %s3086_s19 = scalar_lea.vmem [#allocation5], %s3061_s21 }
  0x46   : > { %s4325_s11 = smov (!%p298_p13, %s1914_s11), 31  ;;  %p1921_p4 = scmp.ge.s32.totalorder %s2907_s26, %s4329_s16 }
  0x47   : > { %s4327_s9 = smov (!%p324_p0, %s1918_s9), 1  ;;  %s1915_s23 = sshll.u32 %s4325_s11, 3  ;;  %v2935_v2 = vmov (!%p1921_p4), 0  }
  0x48   : > { %s3078_s30 = scalar_lea.vmem %s4280_s2, %s1915_s23  ;;  %s1919_s29 = sshll.u32 %s4327_s9, 3  ;;  %2794 = vset.pattern.permute.xlu1 (!%p1921_p4), %v2935_v2  ;;  %2793 = vset.pattern.permute.xlu0 (!%p1921_p4), %v2935_v2 }
  0x49   : > { %s3083_s15 = scalar_lea.vmem %s4281_s3, %s1919_s29  ;;  %348 = sbr.rel (%p1921_p4) target bundleno = 588 (0x24c), region = 32  ;;  %v351_v0 = vld [vmem:[%s3078_s30 + $0x10] sm:$0xff] (!%p1921_p4)  ;;  %v349_v1 = vld [vmem:[%s3078_s30] sm:$0xff] (!%p1921_p4)  ;;  %v352_v4 = vld [vmem:[%s3078_s30 + $0x18] sm:$0xff] (!%p1921_p4) }
  0x4a   : > { %s1922_s5 = sshll.u32 (!%p1921_p4), %s3064_s22, 10  ;;  %v350_v5 = vld [vmem:[%s3078_s30 + $0x8] sm:$0xff] (!%p1921_p4)  ;;  %v353_v11 = vld [vmem:[%s3078_s30 + $0x20] sm:$0xff] (!%p1921_p4)  ;;  %v356_v14 = vld [vmem:[%s3078_s30 + $0x38] sm:$0xff] (!%p1921_p4)  ;;  %p2435_p5 = scmp.ne.s32.totalorder (!%p1921_p4), %s2907_s26, 0 }
  0x4b   : > { %v3092_v3 = vstv (!%p1921_p4), %s1922_s5  ;;  %v354_v10 = vld [vmem:[%s3078_s30 + $0x28] sm:$0xff] (!%p1921_p4)  ;;  %v355_v15 = vld [vmem:[%s3078_s30 + $0x30] sm:$0xff] (!%p1921_p4)  ;;  %v357_v19 = vld [vmem:[%s3078_s30 + $0x40] sm:$0xff] (!%p1921_p4) }
  0x4c   : > { %v385_v6 = vsub.s32 (!%p1921_p4), %v351_v0, %v3092_v3  ;;  %v383_v7 = vsub.s32 (!%p1921_p4), %v349_v1, %v3092_v3  ;;  %v386_v8 = vsub.s32 (!%p1921_p4), %v352_v4, %v3092_v3  ;;  %v384_v9 = vsub.s32 (!%p1921_p4), %v350_v5, %v3092_v3  ;;  %v358_v18 = vld [vmem:[%s3078_s30 + $0x48] sm:$0xff] (!%p1921_p4)  ;;  %v360_v22 = vld [vmem:[%s3078_s30 + $0x58] sm:$0xff] (!%p1921_p4)  ;;  %v359_v23 = vld [vmem:[%s3078_s30 + $0x50] sm:$0xff] (!%p1921_p4) }
  0x4d   : > { %v388_v12 = vsub.s32 (!%p1921_p4), %v354_v10, %v3092_v3  ;;  %v387_v13 = vsub.s32 (!%p1921_p4), %v353_v11, %v3092_v3  ;;  %v390_v16 = vsub.s32 (!%p1921_p4), %v356_v14, %v3092_v3  ;;  %v389_v17 = vsub.s32 (!%p1921_p4), %v355_v15, %v3092_v3  ;;  %v362_v26 = vld [vmem:[%s3078_s30 + $0x68] sm:$0xff] (!%p1921_p4)  ;;  %v361_v27 = vld [vmem:[%s3078_s30 + $0x60] sm:$0xff] (!%p1921_p4)  ;;  %v364_v30 = vld [vmem:[%s3078_s30 + $0x78] sm:$0xff] (!%p1921_p4) }
  0x4e   : > { %431 = vperm.xlu1 (!%p1921_p4), %2794, %v385_v6   ;;  %425 = vperm.xlu0 (!%p1921_p4), %2793, %v383_v7   ;;  %v392_v20 = vsub.s32 (!%p1921_p4), %v358_v18, %v3092_v3  ;;  %v391_v21 = vsub.s32 (!%p1921_p4), %v357_v19, %v3092_v3  ;;  %v394_v24 = vsub.s32 (!%p1921_p4), %v360_v22, %v3092_v3  ;;  %v363_v31 = vld [vmem:[%s3078_s30 + $0x70] sm:$0xff] (!%p1921_p4)  ;;  %v366_v34 = vld [vmem:[%s3078_s30 + $0x88] sm:$0xff] (!%p1921_p4)  ;;  %v365_v35 = vld [vmem:[%s3078_s30 + $0x80] sm:$0xff] (!%p1921_p4)  ;;  %v415_v4 = vlaneseq (!%p1921_p4) }
  0x4f   : > { %v393_v25 = vsub.s32 (!%p1921_p4), %v359_v23, %v3092_v3  ;;  %v396_v28 = vsub.s32 (!%p1921_p4), %v362_v26, %v3092_v3  ;;  %v395_v29 = vsub.s32 (!%p1921_p4), %v361_v27, %v3092_v3  ;;  %v398_v32 = vsub.s32 (!%p1921_p4), %v364_v30, %v3092_v3  ;;  %v368_v38 = vld [vmem:[%s3078_s30 + $0x98] sm:$0xff] (!%p1921_p4)  ;;  %v367_v39 = vld [vmem:[%s3078_s30 + $0x90] sm:$0xff] (!%p1921_p4)  ;;  %v370_v42 = vld [vmem:[%s3078_s30 + $0xa8] sm:$0xff] (!%p1921_p4) }
  0x50   : > { %v397_v33 = vsub.s32 %v363_v31, %v3092_v3  ;;  %v400_v36 = vsub.s32 %v366_v34, %v3092_v3  ;;  %v399_v37 = vsub.s32 %v365_v35, %v3092_v3  ;;  %v402_v40 = vsub.s32 %v368_v38, %v3092_v3  ;;  %v369_v43 = vld [vmem:[%s3078_s30 + $0xa0] sm:$0xff]  ;;  %v372_v46 = vld [vmem:[%s3078_s30 + $0xb8] sm:$0xff]  ;;  %v371_v47 = vld [vmem:[%s3078_s30 + $0xb0] sm:$0xff] }
  0x51   : > { %v401_v41 = vsub.s32 %v367_v39, %v3092_v3  ;;  %v404_v44 = vsub.s32 %v370_v42, %v3092_v3  ;;  %v403_v45 = vsub.s32 %v369_v43, %v3092_v3  ;;  %v406_v48 = vsub.s32 %v372_v46, %v3092_v3  ;;  %v374_v50 = vld [vmem:[%s3078_s30 + $0xc8] sm:$0xff]  ;;  %v373_v51 = vld [vmem:[%s3078_s30 + $0xc0] sm:$0xff]  ;;  %v376_v54 = vld [vmem:[%s3078_s30 + $0xd8] sm:$0xff] }
  0x52   : > { %434 = vperm.xlu1 %2794, %v386_v8   ;;  %428 = vperm.xlu0 %2793, %v384_v9   ;;  %v405_v49 = vsub.s32 %v371_v47, %v3092_v3  ;;  %v408_v52 = vsub.s32 %v374_v50, %v3092_v3  ;;  %v407_v53 = vsub.s32 %v373_v51, %v3092_v3  ;;  %v375_v55 = vld [vmem:[%s3078_s30 + $0xd0] sm:$0xff]  ;;  %v378_v58 = vld [vmem:[%s3078_s30 + $0xe8] sm:$0xff]  ;;  %v377_v59 = vld [vmem:[%s3078_s30 + $0xe0] sm:$0xff]  ;;  %v3161_v5 = vand.u32 127, %v415_v4 }
  0x53   : > { %v410_v56 = vsub.s32 %v376_v54, %v3092_v3  ;;  %v409_v57 = vsub.s32 %v375_v55, %v3092_v3  ;;  %v412_v60 = vsub.s32 %v378_v58, %v3092_v3  ;;  %v411_v61 = vsub.s32 %v377_v59, %v3092_v3  ;;  %v380_v62 = vld [vmem:[%s3078_s30 + $0xf8] sm:$0xff]  ;;  %v379_v63 = vld [vmem:[%s3078_s30 + $0xf0] sm:$0xff]  ;;  %v3157_v2 = vld [vmem:[%s3083_s15 + $0x8] sm:$0xff] }
  0x54   : > { %v414_v0 = vsub.s32 %v380_v62, %v3092_v3  ;;  %v413_v1 = vsub.s32 %v379_v63, %v3092_v3  ;;  %1360 = vmatprep.mubr.f32.mxu0 %v3157_v2  ;;  %1449 = vmatprep.mubr.f32.mxu1 %v3157_v2  ;;  %v3168_v8 = vadd.s32 128, %v3161_v5  ;;  %v3171_v3 = vadd.s32 384, %v3161_v5  ;;  %v3594_v46 = vld [vmem:[%s3083_s15 + $0x18] sm:$0xff]  ;;  %v3614_v47 = vld [vmem:[%s3083_s15 + $0x10] sm:$0xff] }
  0x55   : > { %v3178_v11 = vadd.s32 256, %v3161_v5  ;;  %v3559_v42 = vadd.s32 896, %v3161_v5  ;;  %v3565_v43 = vadd.s32 512, %v3161_v5  ;;  %v3680_v50 = vld [vmem:[%s3083_s15 + $0x38] sm:$0xff]  ;;  %v3704_v51 = vld [vmem:[%s3083_s15 + $0x30] sm:$0xff] }
  0x56   : > { %440 = vperm.xlu1 %2794, %v388_v12   ;;  %437 = vperm.xlu0 %2793, %v387_v13   ;;  %v2936_v12 = vmov 1.0|1.0  }
  0x5a   : > { %446 = vperm.xlu1 %2794, %v390_v16   ;;  %443 = vperm.xlu0 %2793, %v389_v17  }
  0x5e   : > { %452 = vperm.xlu1 %2794, %v392_v20   ;;  %449 = vperm.xlu0 %2793, %v391_v21  }
  0x62   : > { %458 = vperm.xlu1 %2794, %v394_v24   ;;  %455 = vperm.xlu0 %2793, %v393_v25  }
  0x66   : > { %464 = vperm.xlu1 %2794, %v396_v28   ;;  %461 = vperm.xlu0 %2793, %v395_v29  }
  0x6a   : > { %470 = vperm.xlu1 %2794, %v398_v32   ;;  %467 = vperm.xlu0 %2793, %v397_v33  }
  0x6e   : > { %476 = vperm.xlu1 %2794, %v400_v36   ;;  %473 = vperm.xlu0 %2793, %v399_v37  }
  0x72   : > { %482 = vperm.xlu1 %2794, %v402_v40   ;;  %479 = vperm.xlu0 %2793, %v401_v41   ;;  %v3551_v41 = vadd.s32 640, %v3161_v5 }
  0x76   : > { %488 = vperm.xlu1 %2794, %v404_v44   ;;  %485 = vperm.xlu0 %2793, %v403_v45   ;;  %v3571_v44 = vadd.s32 768, %v3161_v5  ;;  %v3577_v45 = vld [vmem:[%s3083_s15] sm:$0xff] }
  0x7a   : > { %494 = vperm.xlu1 %2794, %v406_v48   ;;  %491 = vperm.xlu0 %2793, %v405_v49   ;;  %v3635_v48 = vld [vmem:[%s3083_s15 + $0x28] sm:$0xff]  ;;  %v3656_v49 = vld [vmem:[%s3083_s15 + $0x20] sm:$0xff] }
  0x7e   : > { %500 = vperm.xlu1 %2794, %v408_v52   ;;  %497 = vperm.xlu0 %2793, %v407_v53  }
  0x82   : > { %506 = vperm.xlu1 %2794, %v410_v56   ;;  %503 = vperm.xlu0 %2793, %v409_v57  }
  0x86   : > { %512 = vperm.xlu1 %2794, %v412_v60   ;;  %509 = vperm.xlu0 %2793, %v411_v61  }
  0x8a   : > { %518 = vperm.xlu1 %2794, %v414_v0   ;;  %515 = vperm.xlu0 %2793, %v413_v1  }
  0xcd   : > { %v3163_v6 = vpop.permute.xlu1 %431  ;;  %v3165_v7 = vpop.permute.xlu0 %425 }
  0xce   : > { %vm521_vm0 = vcmp.eq.s32.totalorder %v3165_v7, %v3168_v8  ;;  %vm523_vm5 = vcmp.eq.s32.totalorder %v3165_v7, %v3171_v3  ;;  %vm520_vm8 = vcmp.eq.s32.totalorder %v3165_v7, %v3161_v5  ;;  %vm537_vm9 = vcmp.eq.s32.totalorder %v3163_v6, %v3168_v8 }
  0xcf   : > { %vm522_vm12 = vcmp.eq.s32.totalorder %v3165_v7, %v3178_v11  ;;  %vm539_vm13 = vcmp.eq.s32.totalorder %v3163_v6, %v3171_v3 }
  0xd1   : > { %v3173_v9 = vpop.permute.xlu1 %434  ;;  %v3175_v10 = vpop.permute.xlu0 %428 }
  0xd2   : > { %vm529_vm1 = vcmp.eq.s32.totalorder %v3175_v10, %v3168_v8  ;;  %vm531_vm2 = vcmp.eq.s32.totalorder %v3175_v10, %v3171_v3  ;;  %vm528_vm3 = vcmp.eq.s32.totalorder %v3175_v10, %v3161_v5  ;;  %vm530_vm6 = vcmp.eq.s32.totalorder %v3175_v10, %v3178_v11 }
  0xd3   : > { %vm2443_vm4 = vmpackc.low %vm529_vm1, %vm521_vm0  ;;  %vm545_vm10 = vcmp.eq.s32.totalorder %v3173_v9, %v3168_v8  ;;  %vm547_vm14 = vcmp.eq.s32.totalorder %v3173_v9, %v3171_v3  ;;  %vm536_vm0 = vcmp.eq.s32.totalorder %v3163_v6, %v3161_v5  ;;  %vm544_vm1 = vcmp.eq.s32.totalorder %v3173_v9, %v3161_v5 }
  0xd4   : > { %2444 = vmatprep.subr.msk.bf16.mxu0 %vm2443_vm4, %v2936_v12  ;;  %vm2507_vm7 = vmpackc.low %vm531_vm2, %vm523_vm5  ;;  %vm546_vm4 = vcmp.eq.s32.totalorder %v3173_v9, %v3178_v11 }
  0xd5   : > { %2508 = vmatprep.subr.msk.bf16.mxu1 %vm2507_vm7, %v2936_v12  ;;  %v3200_v13 = vpop.permute.xlu1 %440  ;;  %vm2445_vm11 = vmpackc.low %vm528_vm3, %vm520_vm8  ;;  %v3204_v14 = vpop.permute.xlu0 %437  ;;  %vm538_vm3 = vcmp.eq.s32.totalorder %v3163_v6, %v3178_v11 }
  0xd6   : > { %2446 = vmatpush1.bf16.msk.msra.mxu0 %vm2445_vm11, %v2936_v12  ;;  %vm2509_vm15 = vmpackc.low %vm530_vm6, %vm522_vm12  ;;  %vm553_vm6 = vcmp.eq.s32.totalorder %v3204_v14, %v3168_v8  ;;  %vm561_vm7 = vcmp.eq.s32.totalorder %v3200_v13, %v3168_v8  ;;  %vm552_vm12 = vcmp.eq.s32.totalorder %v3204_v14, %v3161_v5 }
  0xd7   : > { %2510 = vmatpush1.bf16.msk.msra.mxu1 %vm2509_vm15, %v2936_v12  ;;  %vm2447_vm2 = vmpackc.low %vm545_vm10, %vm537_vm9  ;;  %vm555_vm9 = vcmp.eq.s32.totalorder %v3204_v14, %v3171_v3  ;;  %vm563_vm10 = vcmp.eq.s32.totalorder %v3200_v13, %v3171_v3  ;;  %vm554_vm15 = vcmp.eq.s32.totalorder %v3204_v14, %v3178_v11 }
  0xd8   : > { %2448 = vmatprep.subr.msk.bf16.mxu0 %vm2447_vm2, %v2936_v12  ;;  %vm2511_vm5 = vmpackc.low %vm547_vm14, %vm539_vm13  ;;  %vm560_vm13 = vcmp.eq.s32.totalorder %v3200_v13, %v3161_v5 }
  0xd9   : > { %2512 = vmatprep.subr.msk.bf16.mxu1 %vm2511_vm5, %v2936_v12  ;;  %v3229_v15 = vpop.permute.xlu1 %446  ;;  %vm2449_vm8 = vmpackc.low %vm544_vm1, %vm536_vm0  ;;  %v3231_v16 = vpop.permute.xlu0 %443  ;;  %vm562_vm0 = vcmp.eq.s32.totalorder %v3200_v13, %v3178_v11 }
  0xda   : > { %2450 = vmatpush1.bf16.msk.msra.mxu0 %vm2449_vm8, %v2936_v12  ;;  %vm2513_vm11 = vmpackc.low %vm546_vm4, %vm538_vm3  ;;  %vm569_vm2 = vcmp.eq.s32.totalorder %v3231_v16, %v3168_v8  ;;  %vm577_vm3 = vcmp.eq.s32.totalorder %v3229_v15, %v3168_v8  ;;  %vm571_vm5 = vcmp.eq.s32.totalorder %v3231_v16, %v3171_v3  ;;  %vm568_vm8 = vcmp.eq.s32.totalorder %v3231_v16, %v3161_v5 }
  0xdb   : > { %2514 = vmatpush1.bf16.msk.msra.mxu1 %vm2513_vm11, %v2936_v12  ;;  %vm2451_vm14 = vmpackc.low %vm561_vm7, %vm553_vm6  ;;  %vm579_vm6 = vcmp.eq.s32.totalorder %v3229_v15, %v3171_v3  ;;  %vm570_vm11 = vcmp.eq.s32.totalorder %v3231_v16, %v3178_v11 }
  0xdc   : > { %2452 = vmatprep.subr.msk.bf16.mxu0 %vm2451_vm14, %v2936_v12  ;;  %vm2515_vm1 = vmpackc.low %vm563_vm10, %vm555_vm9  ;;  %vm576_vm9 = vcmp.eq.s32.totalorder %v3229_v15, %v3161_v5 }
  0xdd   : > { %2516 = vmatprep.subr.msk.bf16.mxu1 %vm2515_vm1, %v2936_v12  ;;  %v3253_v17 = vpop.permute.xlu1 %452  ;;  %vm2453_vm4 = vmpackc.low %vm560_vm13, %vm552_vm12  ;;  %v3255_v18 = vpop.permute.xlu0 %449  ;;  %vm578_vm12 = vcmp.eq.s32.totalorder %v3229_v15, %v3178_v11 }
  0xde   : > { %2454 = vmatpush1.bf16.msk.msra.mxu0 %vm2453_vm4, %v2936_v12  ;;  %vm2517_vm7 = vmpackc.low %vm562_vm0, %vm554_vm15  ;;  %vm585_vm14 = vcmp.eq.s32.totalorder %v3255_v18, %v3168_v8  ;;  %vm593_vm15 = vcmp.eq.s32.totalorder %v3253_v17, %v3168_v8  ;;  %vm587_vm1 = vcmp.eq.s32.totalorder %v3255_v18, %v3171_v3  ;;  %vm584_vm4 = vcmp.eq.s32.totalorder %v3255_v18, %v3161_v5 }
  0xdf   : > { %2518 = vmatpush1.bf16.msk.msra.mxu1 %vm2517_vm7, %v2936_v12  ;;  %vm2455_vm10 = vmpackc.low %vm577_vm3, %vm569_vm2  ;;  %vm595_vm2 = vcmp.eq.s32.totalorder %v3253_v17, %v3171_v3  ;;  %vm586_vm7 = vcmp.eq.s32.totalorder %v3255_v18, %v3178_v11 }
  0xe0   : > { %2456 = vmatprep.subr.msk.bf16.mxu0 %vm2455_vm10, %v2936_v12  ;;  %vm2519_vm13 = vmpackc.low %vm579_vm6, %vm571_vm5  ;;  %vm592_vm5 = vcmp.eq.s32.totalorder %v3253_v17, %v3161_v5 }
  0xe1   : > { %2520 = vmatprep.subr.msk.bf16.mxu1 %vm2519_vm13, %v2936_v12  ;;  %v3277_v19 = vpop.permute.xlu1 %458  ;;  %vm2457_vm0 = vmpackc.low %vm576_vm9, %vm568_vm8  ;;  %v3279_v20 = vpop.permute.xlu0 %455  ;;  %vm594_vm8 = vcmp.eq.s32.totalorder %v3253_v17, %v3178_v11 }
  0xe2   : > { %2458 = vmatpush1.bf16.msk.msra.mxu0 %vm2457_vm0, %v2936_v12  ;;  %vm2521_vm3 = vmpackc.low %vm578_vm12, %vm570_vm11  ;;  %vm601_vm10 = vcmp.eq.s32.totalorder %v3279_v20, %v3168_v8  ;;  %vm609_vm11 = vcmp.eq.s32.totalorder %v3277_v19, %v3168_v8  ;;  %vm603_vm13 = vcmp.eq.s32.totalorder %v3279_v20, %v3171_v3  ;;  %vm600_vm0 = vcmp.eq.s32.totalorder %v3279_v20, %v3161_v5 }
  0xe3   : > { %2522 = vmatpush1.bf16.msk.msra.mxu1 %vm2521_vm3, %v2936_v12  ;;  %vm2459_vm6 = vmpackc.low %vm593_vm15, %vm585_vm14  ;;  %vm611_vm14 = vcmp.eq.s32.totalorder %v3277_v19, %v3171_v3  ;;  %vm602_vm3 = vcmp.eq.s32.totalorder %v3279_v20, %v3178_v11 }
  0xe4   : > { %2460 = vmatprep.subr.msk.bf16.mxu0 %vm2459_vm6, %v2936_v12  ;;  %vm2523_vm9 = vmpackc.low %vm595_vm2, %vm587_vm1  ;;  %vm608_vm1 = vcmp.eq.s32.totalorder %v3277_v19, %v3161_v5 }
  0xe5   : > { %2524 = vmatprep.subr.msk.bf16.mxu1 %vm2523_vm9, %v2936_v12  ;;  %v3301_v21 = vpop.permute.xlu1 %464  ;;  %vm2461_vm12 = vmpackc.low %vm592_vm5, %vm584_vm4  ;;  %v3303_v22 = vpop.permute.xlu0 %461  ;;  %vm610_vm4 = vcmp.eq.s32.totalorder %v3277_v19, %v3178_v11 }
  0xe6   : > { %2462 = vmatpush1.bf16.msk.msra.mxu0 %vm2461_vm12, %v2936_v12  ;;  %vm2525_vm15 = vmpackc.low %vm594_vm8, %vm586_vm7  ;;  %vm617_vm6 = vcmp.eq.s32.totalorder %v3303_v22, %v3168_v8  ;;  %vm625_vm7 = vcmp.eq.s32.totalorder %v3301_v21, %v3168_v8  ;;  %vm619_vm9 = vcmp.eq.s32.totalorder %v3303_v22, %v3171_v3  ;;  %vm616_vm12 = vcmp.eq.s32.totalorder %v3303_v22, %v3161_v5 }
  0xe7   : > { %2526 = vmatpush1.bf16.msk.msra.mxu1 %vm2525_vm15, %v2936_v12  ;;  %vm2463_vm2 = vmpackc.low %vm609_vm11, %vm601_vm10  ;;  %vm627_vm10 = vcmp.eq.s32.totalorder %v3301_v21, %v3171_v3  ;;  %vm618_vm15 = vcmp.eq.s32.totalorder %v3303_v22, %v3178_v11 }
  0xe8   : > { %2464 = vmatprep.subr.msk.bf16.mxu0 %vm2463_vm2, %v2936_v12  ;;  %vm2527_vm5 = vmpackc.low %vm611_vm14, %vm603_vm13  ;;  %vm624_vm13 = vcmp.eq.s32.totalorder %v3301_v21, %v3161_v5 }
  0xe9   : > { %2528 = vmatprep.subr.msk.bf16.mxu1 %vm2527_vm5, %v2936_v12  ;;  %v3325_v23 = vpop.permute.xlu1 %470  ;;  %vm2465_vm8 = vmpackc.low %vm608_vm1, %vm600_vm0  ;;  %v3327_v24 = vpop.permute.xlu0 %467  ;;  %vm626_vm0 = vcmp.eq.s32.totalorder %v3301_v21, %v3178_v11 }
  0xea   : > { %2466 = vmatpush1.bf16.msk.msra.mxu0 %vm2465_vm8, %v2936_v12  ;;  %vm2529_vm11 = vmpackc.low %vm610_vm4, %vm602_vm3  ;;  %vm633_vm2 = vcmp.eq.s32.totalorder %v3327_v24, %v3168_v8  ;;  %vm641_vm3 = vcmp.eq.s32.totalorder %v3325_v23, %v3168_v8  ;;  %vm635_vm5 = vcmp.eq.s32.totalorder %v3327_v24, %v3171_v3  ;;  %vm632_vm8 = vcmp.eq.s32.totalorder %v3327_v24, %v3161_v5 }
  0xeb   : > { %2530 = vmatpush1.bf16.msk.msra.mxu1 %vm2529_vm11, %v2936_v12  ;;  %vm2467_vm14 = vmpackc.low %vm625_vm7, %vm617_vm6  ;;  %vm643_vm6 = vcmp.eq.s32.totalorder %v3325_v23, %v3171_v3  ;;  %vm634_vm11 = vcmp.eq.s32.totalorder %v3327_v24, %v3178_v11 }
  0xec   : > { %2468 = vmatprep.subr.msk.bf16.mxu0 %vm2467_vm14, %v2936_v12  ;;  %vm2531_vm1 = vmpackc.low %vm627_vm10, %vm619_vm9  ;;  %vm640_vm9 = vcmp.eq.s32.totalorder %v3325_v23, %v3161_v5 }
  0xed   : > { %2532 = vmatprep.subr.msk.bf16.mxu1 %vm2531_vm1, %v2936_v12  ;;  %v3349_v25 = vpop.permute.xlu1 %476  ;;  %vm2469_vm4 = vmpackc.low %vm624_vm13, %vm616_vm12  ;;  %v3351_v26 = vpop.permute.xlu0 %473  ;;  %vm642_vm12 = vcmp.eq.s32.totalorder %v3325_v23, %v3178_v11 }
  0xee   : > { %2470 = vmatpush1.bf16.msk.msra.mxu0 %vm2469_vm4, %v2936_v12  ;;  %vm2533_vm7 = vmpackc.low %vm626_vm0, %vm618_vm15  ;;  %vm649_vm14 = vcmp.eq.s32.totalorder %v3351_v26, %v3168_v8  ;;  %vm657_vm15 = vcmp.eq.s32.totalorder %v3349_v25, %v3168_v8  ;;  %vm651_vm1 = vcmp.eq.s32.totalorder %v3351_v26, %v3171_v3  ;;  %vm648_vm4 = vcmp.eq.s32.totalorder %v3351_v26, %v3161_v5 }
  0xef   : > { %2534 = vmatpush1.bf16.msk.msra.mxu1 %vm2533_vm7, %v2936_v12  ;;  %vm2471_vm10 = vmpackc.low %vm641_vm3, %vm633_vm2  ;;  %vm659_vm2 = vcmp.eq.s32.totalorder %v3349_v25, %v3171_v3  ;;  %vm650_vm7 = vcmp.eq.s32.totalorder %v3351_v26, %v3178_v11 }
  0xf0   : > { %2472 = vmatprep.subr.msk.bf16.mxu0 %vm2471_vm10, %v2936_v12  ;;  %vm2535_vm13 = vmpackc.low %vm643_vm6, %vm635_vm5  ;;  %vm656_vm5 = vcmp.eq.s32.totalorder %v3349_v25, %v3161_v5 }
  0xf1   : > { %2536 = vmatprep.subr.msk.bf16.mxu1 %vm2535_vm13, %v2936_v12  ;;  %v3373_v27 = vpop.permute.xlu1 %482  ;;  %vm2473_vm0 = vmpackc.low %vm640_vm9, %vm632_vm8  ;;  %v3375_v28 = vpop.permute.xlu0 %479  ;;  %vm658_vm8 = vcmp.eq.s32.totalorder %v3349_v25, %v3178_v11 }
  0xf2   : > { %2474 = vmatpush1.bf16.msk.msra.mxu0 %vm2473_vm0, %v2936_v12  ;;  %vm2537_vm3 = vmpackc.low %vm642_vm12, %vm634_vm11  ;;  %vm665_vm10 = vcmp.eq.s32.totalorder %v3375_v28, %v3168_v8  ;;  %vm673_vm11 = vcmp.eq.s32.totalorder %v3373_v27, %v3168_v8  ;;  %vm667_vm13 = vcmp.eq.s32.totalorder %v3375_v28, %v3171_v3  ;;  %vm664_vm0 = vcmp.eq.s32.totalorder %v3375_v28, %v3161_v5 }
  0xf3   : > { %2538 = vmatpush1.bf16.msk.msra.mxu1 %vm2537_vm3, %v2936_v12  ;;  %vm2475_vm6 = vmpackc.low %vm657_vm15, %vm649_vm14  ;;  %vm675_vm14 = vcmp.eq.s32.totalorder %v3373_v27, %v3171_v3  ;;  %vm666_vm3 = vcmp.eq.s32.totalorder %v3375_v28, %v3178_v11 }
  0xf4   : > { %2476 = vmatprep.subr.msk.bf16.mxu0 %vm2475_vm6, %v2936_v12  ;;  %vm2539_vm9 = vmpackc.low %vm659_vm2, %vm651_vm1  ;;  %vm672_vm1 = vcmp.eq.s32.totalorder %v3373_v27, %v3161_v5 }
  0xf5   : > { %2540 = vmatprep.subr.msk.bf16.mxu1 %vm2539_vm9, %v2936_v12  ;;  %v3397_v29 = vpop.permute.xlu1 %488  ;;  %vm2477_vm12 = vmpackc.low %vm656_vm5, %vm648_vm4  ;;  %v3399_v30 = vpop.permute.xlu0 %485  ;;  %vm674_vm4 = vcmp.eq.s32.totalorder %v3373_v27, %v3178_v11 }
  0xf6   : > { %2478 = vmatpush1.bf16.msk.msra.mxu0 %vm2477_vm12, %v2936_v12  ;;  %vm2541_vm15 = vmpackc.low %vm658_vm8, %vm650_vm7  ;;  %vm681_vm6 = vcmp.eq.s32.totalorder %v3399_v30, %v3168_v8  ;;  %vm689_vm7 = vcmp.eq.s32.totalorder %v3397_v29, %v3168_v8  ;;  %vm683_vm9 = vcmp.eq.s32.totalorder %v3399_v30, %v3171_v3  ;;  %vm680_vm12 = vcmp.eq.s32.totalorder %v3399_v30, %v3161_v5 }
  0xf7   : > { %2542 = vmatpush1.bf16.msk.msra.mxu1 %vm2541_vm15, %v2936_v12  ;;  %vm2479_vm2 = vmpackc.low %vm673_vm11, %vm665_vm10  ;;  %vm691_vm10 = vcmp.eq.s32.totalorder %v3397_v29, %v3171_v3  ;;  %vm682_vm15 = vcmp.eq.s32.totalorder %v3399_v30, %v3178_v11 }
  0xf8   : > { %2480 = vmatprep.subr.msk.bf16.mxu0 %vm2479_vm2, %v2936_v12  ;;  %vm2543_vm5 = vmpackc.low %vm675_vm14, %vm667_vm13  ;;  %vm688_vm13 = vcmp.eq.s32.totalorder %v3397_v29, %v3161_v5 }
  0xf9   : > { %2544 = vmatprep.subr.msk.bf16.mxu1 %vm2543_vm5, %v2936_v12  ;;  %v3421_v31 = vpop.permute.xlu1 %494  ;;  %vm2481_vm8 = vmpackc.low %vm672_vm1, %vm664_vm0  ;;  %v3423_v32 = vpop.permute.xlu0 %491  ;;  %vm690_vm0 = vcmp.eq.s32.totalorder %v3397_v29, %v3178_v11 }
  0xfa   : > { %2482 = vmatpush1.bf16.msk.msra.mxu0 %vm2481_vm8, %v2936_v12  ;;  %vm2545_vm11 = vmpackc.low %vm674_vm4, %vm666_vm3  ;;  %vm697_vm2 = vcmp.eq.s32.totalorder %v3423_v32, %v3168_v8  ;;  %vm705_vm3 = vcmp.eq.s32.totalorder %v3421_v31, %v3168_v8  ;;  %vm699_vm5 = vcmp.eq.s32.totalorder %v3423_v32, %v3171_v3  ;;  %vm696_vm8 = vcmp.eq.s32.totalorder %v3423_v32, %v3161_v5 }
  0xfb   : > { %2546 = vmatpush1.bf16.msk.msra.mxu1 %vm2545_vm11, %v2936_v12  ;;  %vm2483_vm14 = vmpackc.low %vm689_vm7, %vm681_vm6  ;;  %vm707_vm6 = vcmp.eq.s32.totalorder %v3421_v31, %v3171_v3  ;;  %vm698_vm11 = vcmp.eq.s32.totalorder %v3423_v32, %v3178_v11 }
  0xfc   : > { %2484 = vmatprep.subr.msk.bf16.mxu0 %vm2483_vm14, %v2936_v12  ;;  %vm2547_vm1 = vmpackc.low %vm691_vm10, %vm683_vm9  ;;  %vm704_vm9 = vcmp.eq.s32.totalorder %v3421_v31, %v3161_v5 }
  0xfd   : > { %2548 = vmatprep.subr.msk.bf16.mxu1 %vm2547_vm1, %v2936_v12  ;;  %v3445_v33 = vpop.permute.xlu1 %500  ;;  %vm2485_vm4 = vmpackc.low %vm688_vm13, %vm680_vm12  ;;  %v3447_v34 = vpop.permute.xlu0 %497  ;;  %vm706_vm12 = vcmp.eq.s32.totalorder %v3421_v31, %v3178_v11 }
  0xfe   : > { %2486 = vmatpush1.bf16.msk.msra.mxu0 %vm2485_vm4, %v2936_v12  ;;  %vm2549_vm7 = vmpackc.low %vm690_vm0, %vm682_vm15  ;;  %vm713_vm14 = vcmp.eq.s32.totalorder %v3447_v34, %v3168_v8  ;;  %vm721_vm15 = vcmp.eq.s32.totalorder %v3445_v33, %v3168_v8  ;;  %vm715_vm1 = vcmp.eq.s32.totalorder %v3447_v34, %v3171_v3  ;;  %vm712_vm4 = vcmp.eq.s32.totalorder %v3447_v34, %v3161_v5 }
  0xff   : > { %2550 = vmatpush1.bf16.msk.msra.mxu1 %vm2549_vm7, %v2936_v12  ;;  %vm2487_vm10 = vmpackc.low %vm705_vm3, %vm697_vm2  ;;  %vm723_vm2 = vcmp.eq.s32.totalorder %v3445_v33, %v3171_v3  ;;  %vm714_vm7 = vcmp.eq.s32.totalorder %v3447_v34, %v3178_v11 }
 0x100   : > { %2488 = vmatprep.subr.msk.bf16.mxu0 %vm2487_vm10, %v2936_v12  ;;  %vm2551_vm13 = vmpackc.low %vm707_vm6, %vm699_vm5  ;;  %vm720_vm5 = vcmp.eq.s32.totalorder %v3445_v33, %v3161_v5 }
 0x101   : > { %2552 = vmatprep.subr.msk.bf16.mxu1 %vm2551_vm13, %v2936_v12  ;;  %v3469_v35 = vpop.permute.xlu1 %506  ;;  %vm2489_vm0 = vmpackc.low %vm704_vm9, %vm696_vm8  ;;  %v3471_v36 = vpop.permute.xlu0 %503  ;;  %vm722_vm8 = vcmp.eq.s32.totalorder %v3445_v33, %v3178_v11 }
 0x102   : > { %2490 = vmatpush1.bf16.msk.msra.mxu0 %vm2489_vm0, %v2936_v12  ;;  %vm2553_vm3 = vmpackc.low %vm706_vm12, %vm698_vm11  ;;  %vm729_vm10 = vcmp.eq.s32.totalorder %v3471_v36, %v3168_v8  ;;  %vm737_vm11 = vcmp.eq.s32.totalorder %v3469_v35, %v3168_v8  ;;  %vm731_vm13 = vcmp.eq.s32.totalorder %v3471_v36, %v3171_v3  ;;  %vm728_vm0 = vcmp.eq.s32.totalorder %v3471_v36, %v3161_v5 }
 0x103   : > { %2554 = vmatpush1.bf16.msk.msra.mxu1 %vm2553_vm3, %v2936_v12  ;;  %vm2491_vm6 = vmpackc.low %vm721_vm15, %vm713_vm14  ;;  %vm739_vm14 = vcmp.eq.s32.totalorder %v3469_v35, %v3171_v3  ;;  %vm730_vm3 = vcmp.eq.s32.totalorder %v3471_v36, %v3178_v11 }
 0x104   : > { %2492 = vmatprep.subr.msk.bf16.mxu0 %vm2491_vm6, %v2936_v12  ;;  %vm2555_vm9 = vmpackc.low %vm723_vm2, %vm715_vm1  ;;  %vm736_vm1 = vcmp.eq.s32.totalorder %v3469_v35, %v3161_v5 }
 0x105   : > { %2556 = vmatprep.subr.msk.bf16.mxu1 %vm2555_vm9, %v2936_v12  ;;  %v3493_v37 = vpop.permute.xlu1 %512  ;;  %vm2493_vm12 = vmpackc.low %vm720_vm5, %vm712_vm4  ;;  %v3495_v38 = vpop.permute.xlu0 %509  ;;  %vm738_vm4 = vcmp.eq.s32.totalorder %v3469_v35, %v3178_v11 }
 0x106   : > { %2494 = vmatpush1.bf16.msk.msra.mxu0 %vm2493_vm12, %v2936_v12  ;;  %vm2557_vm15 = vmpackc.low %vm722_vm8, %vm714_vm7  ;;  %vm745_vm6 = vcmp.eq.s32.totalorder %v3495_v38, %v3168_v8  ;;  %vm753_vm7 = vcmp.eq.s32.totalorder %v3493_v37, %v3168_v8  ;;  %vm747_vm9 = vcmp.eq.s32.totalorder %v3495_v38, %v3171_v3  ;;  %vm744_vm12 = vcmp.eq.s32.totalorder %v3495_v38, %v3161_v5 }
 0x107   : > { %2558 = vmatpush1.bf16.msk.msra.mxu1 %vm2557_vm15, %v2936_v12  ;;  %vm2495_vm2 = vmpackc.low %vm737_vm11, %vm729_vm10  ;;  %vm755_vm10 = vcmp.eq.s32.totalorder %v3493_v37, %v3171_v3  ;;  %vm746_vm15 = vcmp.eq.s32.totalorder %v3495_v38, %v3178_v11 }
 0x108   : > { %2496 = vmatprep.subr.msk.bf16.mxu0 %vm2495_vm2, %v2936_v12  ;;  %vm2559_vm5 = vmpackc.low %vm739_vm14, %vm731_vm13  ;;  %vm752_vm13 = vcmp.eq.s32.totalorder %v3493_v37, %v3161_v5 }
 0x109   : > { %2560 = vmatprep.subr.msk.bf16.mxu1 %vm2559_vm5, %v2936_v12  ;;  %v3517_v39 = vpop.permute.xlu1 %518  ;;  %vm2497_vm8 = vmpackc.low %vm736_vm1, %vm728_vm0  ;;  %v3519_v40 = vpop.permute.xlu0 %515  ;;  %vm754_vm0 = vcmp.eq.s32.totalorder %v3493_v37, %v3178_v11 }
 0x10a   : > { %2498 = vmatpush1.bf16.msk.msra.mxu0 %vm2497_vm8, %v2936_v12  ;;  %vm2561_vm11 = vmpackc.low %vm738_vm4, %vm730_vm3  ;;  %vm761_vm2 = vcmp.eq.s32.totalorder %v3519_v40, %v3168_v8  ;;  %vm769_vm3 = vcmp.eq.s32.totalorder %v3517_v39, %v3168_v8  ;;  %vm763_vm5 = vcmp.eq.s32.totalorder %v3519_v40, %v3171_v3  ;;  %vm760_vm8 = vcmp.eq.s32.totalorder %v3519_v40, %v3161_v5 }
 0x10b   : > { %2562 = vmatpush1.bf16.msk.msra.mxu1 %vm2561_vm11, %v2936_v12  ;;  %vm2499_vm14 = vmpackc.low %vm753_vm7, %vm745_vm6  ;;  %vm771_vm6 = vcmp.eq.s32.totalorder %v3517_v39, %v3171_v3  ;;  %vm762_vm11 = vcmp.eq.s32.totalorder %v3519_v40, %v3178_v11 }
 0x10c   : > { %2500 = vmatprep.subr.msk.bf16.mxu0 %vm2499_vm14, %v2936_v12  ;;  %vm2563_vm1 = vmpackc.low %vm755_vm10, %vm747_vm9  ;;  %vm768_vm9 = vcmp.eq.s32.totalorder %v3517_v39, %v3161_v5  ;;  %vm533_vm14 = vcmp.eq.s32.totalorder %v3175_v10, %v3551_v41 }
 0x10d   : > { %2564 = vmatprep.subr.msk.bf16.mxu1 %vm2563_vm1, %v2936_v12  ;;  %vm2501_vm4 = vmpackc.low %vm752_vm13, %vm744_vm12  ;;  %vm770_vm12 = vcmp.eq.s32.totalorder %v3517_v39, %v3178_v11 }
 0x10e   : > { %2502 = vmatpush1.bf16.msk.msra.mxu0 %vm2501_vm4, %v2936_v12  ;;  %vm2565_vm7 = vmpackc.low %vm754_vm0, %vm746_vm15  ;;  %vm535_vm0 = vcmp.eq.s32.totalorder %v3175_v10, %v3559_v42 }
 0x10f   : > { %2566 = vmatpush1.bf16.msk.msra.mxu1 %vm2565_vm7, %v2936_v12  ;;  %vm2503_vm10 = vmpackc.low %vm769_vm3, %vm761_vm2  ;;  %vm525_vm2 = vcmp.eq.s32.totalorder %v3165_v7, %v3551_v41  ;;  %vm532_vm3 = vcmp.eq.s32.totalorder %v3175_v10, %v3565_v43 }
 0x110   : > { %2504 = vmatprep.subr.msk.bf16.mxu0 %vm2503_vm10, %v2936_v12  ;;  %vm2567_vm13 = vmpackc.low %vm771_vm6, %vm763_vm5  ;;  %vm527_vm5 = vcmp.eq.s32.totalorder %v3165_v7, %v3559_v42  ;;  %vm534_vm6 = vcmp.eq.s32.totalorder %v3175_v10, %v3571_v44  ;;  %vm549_vm10 = vcmp.eq.s32.totalorder %v3173_v9, %v3551_v41 }
 0x111   : > { %2568 = vmatprep.subr.msk.bf16.mxu1 %vm2567_vm13, %v2936_v12  ;;  %vm2505_vm15 = vmpackc.low %vm768_vm9, %vm760_vm8  ;;  %vm524_vm8 = vcmp.eq.s32.totalorder %v3165_v7, %v3565_v43  ;;  %vm541_vm9 = vcmp.eq.s32.totalorder %v3163_v6, %v3551_v41  ;;  %vm543_vm13 = vcmp.eq.s32.totalorder %v3163_v6, %v3559_v42 }
 0x112   : > { %2506 = vmatpush1.bf16.msk.msra.mxu0 %vm2505_vm15, %v2936_v12  ;;  %vm2569_vm1 = vmpackc.low %vm770_vm12, %vm762_vm11  ;;  %vm526_vm12 = vcmp.eq.s32.totalorder %v3165_v7, %v3571_v44 }
 0x113   : > { %2570 = vmatpush1.bf16.msk.msra.mxu1 %vm2569_vm1, %v2936_v12  ;;  %vm2571_vm4 = vmpackc.low %vm533_vm14, %vm525_vm2  ;;  %vm551_vm14 = vcmp.eq.s32.totalorder %v3173_v9, %v3559_v42  ;;  %vm548_vm1 = vcmp.eq.s32.totalorder %v3173_v9, %v3565_v43 }
 0x114   : > { %2572 = vmatprep.subr.msk.bf16.mxu0 %vm2571_vm4, %v2936_v12  ;;  %vm2635_vm7 = vmpackc.low %vm535_vm0, %vm527_vm5  ;;  %vm540_vm0 = vcmp.eq.s32.totalorder %v3163_v6, %v3565_v43  ;;  %vm550_vm4 = vcmp.eq.s32.totalorder %v3173_v9, %v3571_v44 }
 0x115   : > { %2636 = vmatprep.subr.msk.bf16.mxu1 %vm2635_vm7, %v2936_v12  ;;  %1361 = vmatmul.mubr.f32.vlgmr.msra.gmra.mrb[0].mxu0 %v3577_v45  ;;  %vm2573_vm11 = vmpackc.low %vm532_vm3, %vm524_vm8  ;;  %vm542_vm3 = vcmp.eq.s32.totalorder %v3163_v6, %v3571_v44  ;;  %vm565_vm7 = vcmp.eq.s32.totalorder %v3200_v13, %v3551_v41 }
 0x116   : > { %1450 = vmatmul.mubr.f32.vlgmr.msra.gmra.mrb[0].mxu1 %v3577_v45  ;;  %2574 = vmatpush1.bf16.msk.msra.mxu0 %vm2573_vm11, %v2936_v12  ;;  %vm2637_vm15 = vmpackc.low %vm534_vm6, %vm526_vm12  ;;  %vm557_vm6 = vcmp.eq.s32.totalorder %v3204_v14, %v3551_v41  ;;  %vm556_vm12 = vcmp.eq.s32.totalorder %v3204_v14, %v3565_v43 }
 0x117   : > { %2638 = vmatpush1.bf16.msk.msra.mxu1 %vm2637_vm15, %v2936_v12  ;;  %vm2575_vm2 = vmpackc.low %vm549_vm10, %vm541_vm9  ;;  %1366 = vmatprep.mubr.f32.mxu0 %v3594_v46  ;;  %vm559_vm9 = vcmp.eq.s32.totalorder %v3204_v14, %v3559_v42  ;;  %vm567_vm10 = vcmp.eq.s32.totalorder %v3200_v13, %v3559_v42  ;;  %vm558_vm15 = vcmp.eq.s32.totalorder %v3204_v14, %v3571_v44 }
 0x118   : > { %2576 = vmatprep.subr.msk.bf16.mxu0 %vm2575_vm2, %v2936_v12  ;;  %vm2639_vm5 = vmpackc.low %vm551_vm14, %vm543_vm13  ;;  %1455 = vmatprep.mubr.f32.mxu1 %v3594_v46  ;;  %vm564_vm13 = vcmp.eq.s32.totalorder %v3200_v13, %v3565_v43  ;;  %vm573_vm2 = vcmp.eq.s32.totalorder %v3231_v16, %v3551_v41 }
 0x119   : > { %2640 = vmatprep.subr.msk.bf16.mxu1 %vm2639_vm5, %v2936_v12  ;;  %vm2577_vm8 = vmpackc.low %vm548_vm1, %vm540_vm0  ;;  %1367 = vmatmul.mubr.f32.gmra.mrb[2].mxu0 %v3614_v47  ;;  %vm566_vm0 = vcmp.eq.s32.totalorder %v3200_v13, %v3571_v44  ;;  %vm575_vm5 = vcmp.eq.s32.totalorder %v3231_v16, %v3559_v42 }
 0x11a   : > { %2578 = vmatpush1.bf16.msk.msra.mxu0 %vm2577_vm8, %v2936_v12  ;;  %vm2641_vm11 = vmpackc.low %vm550_vm4, %vm542_vm3  ;;  %1456 = vmatmul.mubr.f32.gmra.mrb[2].mxu1 %v3614_v47  ;;  %vm581_vm3 = vcmp.eq.s32.totalorder %v3229_v15, %v3551_v41  ;;  %vm572_vm8 = vcmp.eq.s32.totalorder %v3231_v16, %v3565_v43 }
 0x11b   : > { %2642 = vmatpush1.bf16.msk.msra.mxu1 %vm2641_vm11, %v2936_v12  ;;  %vm2579_vm14 = vmpackc.low %vm565_vm7, %vm557_vm6  ;;  %1372 = vmatprep.mubr.f32.mxu0 %v3635_v48  ;;  %vm583_vm6 = vcmp.eq.s32.totalorder %v3229_v15, %v3559_v42  ;;  %vm574_vm11 = vcmp.eq.s32.totalorder %v3231_v16, %v3571_v44 }
 0x11c   : > { %2580 = vmatprep.subr.msk.bf16.mxu0 %vm2579_vm14, %v2936_v12  ;;  %vm2643_vm1 = vmpackc.low %vm567_vm10, %vm559_vm9  ;;  %1461 = vmatprep.mubr.f32.mxu1 %v3635_v48  ;;  %vm580_vm9 = vcmp.eq.s32.totalorder %v3229_v15, %v3565_v43  ;;  %vm589_vm14 = vcmp.eq.s32.totalorder %v3255_v18, %v3551_v41 }
 0x11d   : > { %2644 = vmatprep.subr.msk.bf16.mxu1 %vm2643_vm1, %v2936_v12  ;;  %vm2581_vm4 = vmpackc.low %vm564_vm13, %vm556_vm12  ;;  %1373 = vmatmul.mubr.f32.gmra.mrb[4].mxu0 %v3656_v49  ;;  %vm582_vm12 = vcmp.eq.s32.totalorder %v3229_v15, %v3571_v44  ;;  %vm591_vm1 = vcmp.eq.s32.totalorder %v3255_v18, %v3559_v42 }
 0x11e   : > { %2582 = vmatpush1.bf16.msk.msra.mxu0 %vm2581_vm4, %v2936_v12  ;;  %vm2645_vm7 = vmpackc.low %vm566_vm0, %vm558_vm15  ;;  %1462 = vmatmul.mubr.f32.gmra.mrb[4].mxu1 %v3656_v49  ;;  %vm597_vm15 = vcmp.eq.s32.totalorder %v3253_v17, %v3551_v41  ;;  %vm588_vm4 = vcmp.eq.s32.totalorder %v3255_v18, %v3565_v43 }
 0x11f   : > { %2646 = vmatpush1.bf16.msk.msra.mxu1 %vm2645_vm7, %v2936_v12  ;;  %vm2583_vm10 = vmpackc.low %vm581_vm3, %vm573_vm2  ;;  %1378 = vmatprep.mubr.f32.mxu0 %v3680_v50  ;;  %vm599_vm2 = vcmp.eq.s32.totalorder %v3253_v17, %v3559_v42  ;;  %vm590_vm7 = vcmp.eq.s32.totalorder %v3255_v18, %v3571_v44 }
 0x120   : > { %2584 = vmatprep.subr.msk.bf16.mxu0 %vm2583_vm10, %v2936_v12  ;;  %vm2647_vm13 = vmpackc.low %vm583_vm6, %vm575_vm5  ;;  %1467 = vmatprep.mubr.f32.mxu1 %v3680_v50  ;;  %vm596_vm5 = vcmp.eq.s32.totalorder %v3253_v17, %v3565_v43  ;;  %vm605_vm10 = vcmp.eq.s32.totalorder %v3279_v20, %v3551_v41 }
 0x121   : > { %2648 = vmatprep.subr.msk.bf16.mxu1 %vm2647_vm13, %v2936_v12  ;;  %vm2585_vm0 = vmpackc.low %vm580_vm9, %vm572_vm8  ;;  %1379 = vmatmul.mubr.f32.gmra.mrb[6].mxu0 %v3704_v51  ;;  %vm598_vm8 = vcmp.eq.s32.totalorder %v3253_v17, %v3571_v44  ;;  %vm607_vm13 = vcmp.eq.s32.totalorder %v3279_v20, %v3559_v42 }
 0x122   : > { %2586 = vmatpush1.bf16.msk.msra.mxu0 %vm2585_vm0, %v2936_v12  ;;  %vm2649_vm3 = vmpackc.low %vm582_vm12, %vm574_vm11  ;;  %1468 = vmatmul.mubr.f32.gmra.mrb[6].mxu1 %v3704_v51  ;;  %vm613_vm11 = vcmp.eq.s32.totalorder %v3277_v19, %v3551_v41  ;;  %vm604_vm0 = vcmp.eq.s32.totalorder %v3279_v20, %v3565_v43 }
 0x123   : > { %2650 = vmatpush1.bf16.msk.msra.mxu1 %vm2649_vm3, %v2936_v12  ;;  %vm2587_vm6 = vmpackc.low %vm597_vm15, %vm589_vm14  ;;  %1538 = vmatprep.mubr.f32.mxu0 %v3157_v2  ;;  %vm615_vm14 = vcmp.eq.s32.totalorder %v3277_v19, %v3559_v42  ;;  %vm606_vm3 = vcmp.eq.s32.totalorder %v3279_v20, %v3571_v44 }
 0x124   : > { %2588 = vmatprep.subr.msk.bf16.mxu0 %vm2587_vm6, %v2936_v12  ;;  %vm2651_vm9 = vmpackc.low %vm599_vm2, %vm591_vm1  ;;  %1627 = vmatprep.mubr.f32.mxu1 %v3157_v2  ;;  %vm612_vm1 = vcmp.eq.s32.totalorder %v3277_v19, %v3565_v43  ;;  %vm621_vm6 = vcmp.eq.s32.totalorder %v3303_v22, %v3551_v41 }
 0x125   : > { %2652 = vmatprep.subr.msk.bf16.mxu1 %vm2651_vm9, %v2936_v12  ;;  %vm2589_vm12 = vmpackc.low %vm596_vm5, %vm588_vm4  ;;  %vm614_vm4 = vcmp.eq.s32.totalorder %v3277_v19, %v3571_v44  ;;  %vm623_vm9 = vcmp.eq.s32.totalorder %v3303_v22, %v3559_v42 }
 0x126   : > { %2590 = vmatpush1.bf16.msk.msra.mxu0 %vm2589_vm12, %v2936_v12  ;;  %vm2653_vm15 = vmpackc.low %vm598_vm8, %vm590_vm7  ;;  %vm629_vm7 = vcmp.eq.s32.totalorder %v3301_v21, %v3551_v41  ;;  %vm620_vm12 = vcmp.eq.s32.totalorder %v3303_v22, %v3565_v43 }
 0x127   : > { %2654 = vmatpush1.bf16.msk.msra.mxu1 %vm2653_vm15, %v2936_v12  ;;  %vm2591_vm2 = vmpackc.low %vm613_vm11, %vm605_vm10  ;;  %vm631_vm10 = vcmp.eq.s32.totalorder %v3301_v21, %v3559_v42  ;;  %vm622_vm15 = vcmp.eq.s32.totalorder %v3303_v22, %v3571_v44 }
 0x128   : > { %2592 = vmatprep.subr.msk.bf16.mxu0 %vm2591_vm2, %v2936_v12  ;;  %vm2655_vm5 = vmpackc.low %vm615_vm14, %vm607_vm13  ;;  %vm628_vm13 = vcmp.eq.s32.totalorder %v3301_v21, %v3565_v43  ;;  %vm637_vm2 = vcmp.eq.s32.totalorder %v3327_v24, %v3551_v41 }
 0x129   : > { %2656 = vmatprep.subr.msk.bf16.mxu1 %vm2655_vm5, %v2936_v12  ;;  %vm2593_vm8 = vmpackc.low %vm612_vm1, %vm604_vm0  ;;  %vm630_vm0 = vcmp.eq.s32.totalorder %v3301_v21, %v3571_v44  ;;  %vm639_vm5 = vcmp.eq.s32.totalorder %v3327_v24, %v3559_v42 }
 0x12a   : > { %2594 = vmatpush1.bf16.msk.msra.mxu0 %vm2593_vm8, %v2936_v12  ;;  %vm2657_vm11 = vmpackc.low %vm614_vm4, %vm606_vm3  ;;  %vm645_vm3 = vcmp.eq.s32.totalorder %v3325_v23, %v3551_v41  ;;  %vm636_vm8 = vcmp.eq.s32.totalorder %v3327_v24, %v3565_v43 }
 0x12b   : > { %2658 = vmatpush1.bf16.msk.msra.mxu1 %vm2657_vm11, %v2936_v12  ;;  %vm2595_vm14 = vmpackc.low %vm629_vm7, %vm621_vm6  ;;  %vm647_vm6 = vcmp.eq.s32.totalorder %v3325_v23, %v3559_v42  ;;  %vm638_vm11 = vcmp.eq.s32.totalorder %v3327_v24, %v3571_v44 }
 0x12c   : > { %2596 = vmatprep.subr.msk.bf16.mxu0 %vm2595_vm14, %v2936_v12  ;;  %vm2659_vm1 = vmpackc.low %vm631_vm10, %vm623_vm9  ;;  %vm644_vm9 = vcmp.eq.s32.totalorder %v3325_v23, %v3565_v43  ;;  %vm653_vm14 = vcmp.eq.s32.totalorder %v3351_v26, %v3551_v41 }
 0x12d   : > { %2660 = vmatprep.subr.msk.bf16.mxu1 %vm2659_vm1, %v2936_v12  ;;  %vm2597_vm4 = vmpackc.low %vm628_vm13, %vm620_vm12  ;;  %vm646_vm12 = vcmp.eq.s32.totalorder %v3325_v23, %v3571_v44  ;;  %vm655_vm1 = vcmp.eq.s32.totalorder %v3351_v26, %v3559_v42 }
 0x12e   : > { %2598 = vmatpush1.bf16.msk.msra.mxu0 %vm2597_vm4, %v2936_v12  ;;  %vm2661_vm7 = vmpackc.low %vm630_vm0, %vm622_vm15  ;;  %vm661_vm15 = vcmp.eq.s32.totalorder %v3349_v25, %v3551_v41  ;;  %vm652_vm4 = vcmp.eq.s32.totalorder %v3351_v26, %v3565_v43 }
 0x12f   : > { %2662 = vmatpush1.bf16.msk.msra.mxu1 %vm2661_vm7, %v2936_v12  ;;  %vm2599_vm10 = vmpackc.low %vm645_vm3, %vm637_vm2  ;;  %vm663_vm2 = vcmp.eq.s32.totalorder %v3349_v25, %v3559_v42  ;;  %vm654_vm7 = vcmp.eq.s32.totalorder %v3351_v26, %v3571_v44 }
 0x130   : > { %2600 = vmatprep.subr.msk.bf16.mxu0 %vm2599_vm10, %v2936_v12  ;;  %vm2663_vm13 = vmpackc.low %vm647_vm6, %vm639_vm5  ;;  %vm660_vm5 = vcmp.eq.s32.totalorder %v3349_v25, %v3565_v43  ;;  %vm669_vm10 = vcmp.eq.s32.totalorder %v3375_v28, %v3551_v41 }
 0x131   : > { %2664 = vmatprep.subr.msk.bf16.mxu1 %vm2663_vm13, %v2936_v12  ;;  %vm2601_vm0 = vmpackc.low %vm644_vm9, %vm636_vm8  ;;  %vm662_vm8 = vcmp.eq.s32.totalorder %v3349_v25, %v3571_v44  ;;  %vm671_vm13 = vcmp.eq.s32.totalorder %v3375_v28, %v3559_v42 }
 0x132   : > { %2602 = vmatpush1.bf16.msk.msra.mxu0 %vm2601_vm0, %v2936_v12  ;;  %vm2665_vm3 = vmpackc.low %vm646_vm12, %vm638_vm11  ;;  %vm677_vm11 = vcmp.eq.s32.totalorder %v3373_v27, %v3551_v41  ;;  %vm668_vm0 = vcmp.eq.s32.totalorder %v3375_v28, %v3565_v43 }
 0x133   : > { %2666 = vmatpush1.bf16.msk.msra.mxu1 %vm2665_vm3, %v2936_v12  ;;  %vm2603_vm6 = vmpackc.low %vm661_vm15, %vm653_vm14  ;;  %vm679_vm14 = vcmp.eq.s32.totalorder %v3373_v27, %v3559_v42  ;;  %vm670_vm3 = vcmp.eq.s32.totalorder %v3375_v28, %v3571_v44 }
 0x134   : > { %2604 = vmatprep.subr.msk.bf16.mxu0 %vm2603_vm6, %v2936_v12  ;;  %vm2667_vm9 = vmpackc.low %vm663_vm2, %vm655_vm1  ;;  %vm676_vm1 = vcmp.eq.s32.totalorder %v3373_v27, %v3565_v43  ;;  %vm685_vm6 = vcmp.eq.s32.totalorder %v3399_v30, %v3551_v41 }
 0x135   : > { %2668 = vmatprep.subr.msk.bf16.mxu1 %vm2667_vm9, %v2936_v12  ;;  %vm2605_vm12 = vmpackc.low %vm660_vm5, %vm652_vm4  ;;  %vm678_vm4 = vcmp.eq.s32.totalorder %v3373_v27, %v3571_v44  ;;  %vm687_vm9 = vcmp.eq.s32.totalorder %v3399_v30, %v3559_v42 }
 0x136   : > { %2606 = vmatpush1.bf16.msk.msra.mxu0 %vm2605_vm12, %v2936_v12  ;;  %vm2669_vm15 = vmpackc.low %vm662_vm8, %vm654_vm7  ;;  %vm693_vm7 = vcmp.eq.s32.totalorder %v3397_v29, %v3551_v41  ;;  %vm684_vm12 = vcmp.eq.s32.totalorder %v3399_v30, %v3565_v43 }
 0x137   : > { %2670 = vmatpush1.bf16.msk.msra.mxu1 %vm2669_vm15, %v2936_v12  ;;  %vm2607_vm2 = vmpackc.low %vm677_vm11, %vm669_vm10  ;;  %vm695_vm10 = vcmp.eq.s32.totalorder %v3397_v29, %v3559_v42  ;;  %vm686_vm15 = vcmp.eq.s32.totalorder %v3399_v30, %v3571_v44 }
 0x138   : > { %2608 = vmatprep.subr.msk.bf16.mxu0 %vm2607_vm2, %v2936_v12  ;;  %vm2671_vm5 = vmpackc.low %vm679_vm14, %vm671_vm13  ;;  %vm692_vm13 = vcmp.eq.s32.totalorder %v3397_v29, %v3565_v43  ;;  %vm701_vm2 = vcmp.eq.s32.totalorder %v3423_v32, %v3551_v41 }
 0x139   : > { %2672 = vmatprep.subr.msk.bf16.mxu1 %vm2671_vm5, %v2936_v12  ;;  %vm2609_vm8 = vmpackc.low %vm676_vm1, %vm668_vm0  ;;  %vm694_vm0 = vcmp.eq.s32.totalorder %v3397_v29, %v3571_v44  ;;  %vm703_vm5 = vcmp.eq.s32.totalorder %v3423_v32, %v3559_v42 }
 0x13a   : > { %2610 = vmatpush1.bf16.msk.msra.mxu0 %vm2609_vm8, %v2936_v12  ;;  %vm2673_vm11 = vmpackc.low %vm678_vm4, %vm670_vm3  ;;  %vm709_vm3 = vcmp.eq.s32.totalorder %v3421_v31, %v3551_v41  ;;  %vm700_vm8 = vcmp.eq.s32.totalorder %v3423_v32, %v3565_v43 }
 0x13b   : > { %2674 = vmatpush1.bf16.msk.msra.mxu1 %vm2673_vm11, %v2936_v12  ;;  %vm2611_vm14 = vmpackc.low %vm693_vm7, %vm685_vm6  ;;  %vm711_vm6 = vcmp.eq.s32.totalorder %v3421_v31, %v3559_v42  ;;  %vm702_vm11 = vcmp.eq.s32.totalorder %v3423_v32, %v3571_v44 }
 0x13c   : > { %2612 = vmatprep.subr.msk.bf16.mxu0 %vm2611_vm14, %v2936_v12  ;;  %vm2675_vm1 = vmpackc.low %vm695_vm10, %vm687_vm9  ;;  %vm708_vm9 = vcmp.eq.s32.totalorder %v3421_v31, %v3565_v43  ;;  %vm717_vm14 = vcmp.eq.s32.totalorder %v3447_v34, %v3551_v41 }
 0x13d   : > { %2676 = vmatprep.subr.msk.bf16.mxu1 %vm2675_vm1, %v2936_v12  ;;  %vm2613_vm4 = vmpackc.low %vm692_vm13, %vm684_vm12  ;;  %vm710_vm12 = vcmp.eq.s32.totalorder %v3421_v31, %v3571_v44  ;;  %vm719_vm1 = vcmp.eq.s32.totalorder %v3447_v34, %v3559_v42 }
 0x13e   : > { %2614 = vmatpush1.bf16.msk.msra.mxu0 %vm2613_vm4, %v2936_v12  ;;  %vm2677_vm7 = vmpackc.low %vm694_vm0, %vm686_vm15  ;;  %vm725_vm15 = vcmp.eq.s32.totalorder %v3445_v33, %v3551_v41  ;;  %vm716_vm4 = vcmp.eq.s32.totalorder %v3447_v34, %v3565_v43 }
 0x13f   : > { %2678 = vmatpush1.bf16.msk.msra.mxu1 %vm2677_vm7, %v2936_v12  ;;  %vm2615_vm10 = vmpackc.low %vm709_vm3, %vm701_vm2  ;;  %vm727_vm2 = vcmp.eq.s32.totalorder %v3445_v33, %v3559_v42  ;;  %vm718_vm7 = vcmp.eq.s32.totalorder %v3447_v34, %v3571_v44 }
 0x140   : > { %2616 = vmatprep.subr.msk.bf16.mxu0 %vm2615_vm10, %v2936_v12  ;;  %vm2679_vm13 = vmpackc.low %vm711_vm6, %vm703_vm5  ;;  %vm724_vm5 = vcmp.eq.s32.totalorder %v3445_v33, %v3565_v43  ;;  %vm733_vm10 = vcmp.eq.s32.totalorder %v3471_v36, %v3551_v41 }
 0x141   : > { %2680 = vmatprep.subr.msk.bf16.mxu1 %vm2679_vm13, %v2936_v12  ;;  %vm2617_vm0 = vmpackc.low %vm708_vm9, %vm700_vm8  ;;  %vm726_vm8 = vcmp.eq.s32.totalorder %v3445_v33, %v3571_v44  ;;  %vm735_vm13 = vcmp.eq.s32.totalorder %v3471_v36, %v3559_v42 }
 0x142   : > { %2618 = vmatpush1.bf16.msk.msra.mxu0 %vm2617_vm0, %v2936_v12  ;;  %vm2681_vm3 = vmpackc.low %vm710_vm12, %vm702_vm11  ;;  %vm741_vm11 = vcmp.eq.s32.totalorder %v3469_v35, %v3551_v41  ;;  %vm732_vm0 = vcmp.eq.s32.totalorder %v3471_v36, %v3565_v43 }
 0x143   : > { %2682 = vmatpush1.bf16.msk.msra.mxu1 %vm2681_vm3, %v2936_v12  ;;  %vm2619_vm6 = vmpackc.low %vm725_vm15, %vm717_vm14  ;;  %vm743_vm14 = vcmp.eq.s32.totalorder %v3469_v35, %v3559_v42  ;;  %vm734_vm3 = vcmp.eq.s32.totalorder %v3471_v36, %v3571_v44 }
 0x144   : > { %2620 = vmatprep.subr.msk.bf16.mxu0 %vm2619_vm6, %v2936_v12  ;;  %vm2683_vm9 = vmpackc.low %vm727_vm2, %vm719_vm1  ;;  %vm740_vm1 = vcmp.eq.s32.totalorder %v3469_v35, %v3565_v43  ;;  %vm749_vm6 = vcmp.eq.s32.totalorder %v3495_v38, %v3551_v41 }
 0x145   : > { %2684 = vmatprep.subr.msk.bf16.mxu1 %vm2683_vm9, %v2936_v12  ;;  %vm2621_vm12 = vmpackc.low %vm724_vm5, %vm716_vm4  ;;  %vm742_vm4 = vcmp.eq.s32.totalorder %v3469_v35, %v3571_v44  ;;  %vm751_vm9 = vcmp.eq.s32.totalorder %v3495_v38, %v3559_v42 }
 0x146   : > { %2622 = vmatpush1.bf16.msk.msra.mxu0 %vm2621_vm12, %v2936_v12  ;;  %vm2685_vm15 = vmpackc.low %vm726_vm8, %vm718_vm7  ;;  %vm757_vm7 = vcmp.eq.s32.totalorder %v3493_v37, %v3551_v41  ;;  %vm748_vm12 = vcmp.eq.s32.totalorder %v3495_v38, %v3565_v43 }
 0x147   : > { %2686 = vmatpush1.bf16.msk.msra.mxu1 %vm2685_vm15, %v2936_v12  ;;  %vm2623_vm2 = vmpackc.low %vm741_vm11, %vm733_vm10  ;;  %vm759_vm10 = vcmp.eq.s32.totalorder %v3493_v37, %v3559_v42  ;;  %vm750_vm15 = vcmp.eq.s32.totalorder %v3495_v38, %v3571_v44 }
 0x148   : > { %2624 = vmatprep.subr.msk.bf16.mxu0 %vm2623_vm2, %v2936_v12  ;;  %vm2687_vm5 = vmpackc.low %vm743_vm14, %vm735_vm13  ;;  %vm756_vm13 = vcmp.eq.s32.totalorder %v3493_v37, %v3565_v43  ;;  %vm765_vm2 = vcmp.eq.s32.totalorder %v3519_v40, %v3551_v41 }
 0x149   : > { %2688 = vmatprep.subr.msk.bf16.mxu1 %vm2687_vm5, %v2936_v12  ;;  %vm2625_vm8 = vmpackc.low %vm740_vm1, %vm732_vm0  ;;  %vm758_vm0 = vcmp.eq.s32.totalorder %v3493_v37, %v3571_v44  ;;  %vm767_vm5 = vcmp.eq.s32.totalorder %v3519_v40, %v3559_v42 }
 0x14a   : > { %2626 = vmatpush1.bf16.msk.msra.mxu0 %vm2625_vm8, %v2936_v12  ;;  %vm2689_vm11 = vmpackc.low %vm742_vm4, %vm734_vm3  ;;  %vm773_vm3 = vcmp.eq.s32.totalorder %v3517_v39, %v3551_v41  ;;  %vm764_vm8 = vcmp.eq.s32.totalorder %v3519_v40, %v3565_v43 }
 0x14b   : > { %2690 = vmatpush1.bf16.msk.msra.mxu1 %vm2689_vm11, %v2936_v12  ;;  %vm2627_vm14 = vmpackc.low %vm757_vm7, %vm749_vm6  ;;  %vm775_vm6 = vcmp.eq.s32.totalorder %v3517_v39, %v3559_v42  ;;  %vm766_vm11 = vcmp.eq.s32.totalorder %v3519_v40, %v3571_v44 }
 0x14c   : > { %2628 = vmatprep.subr.msk.bf16.mxu0 %vm2627_vm14, %v2936_v12  ;;  %vm2691_vm1 = vmpackc.low %vm759_vm10, %vm751_vm9  ;;  %vm772_vm9 = vcmp.eq.s32.totalorder %v3517_v39, %v3565_v43 }
 0x14d   : > { %2692 = vmatprep.subr.msk.bf16.mxu1 %vm2691_vm1, %v2936_v12  ;;  %vm2629_vm4 = vmpackc.low %vm756_vm13, %vm748_vm12  ;;  %vm774_vm12 = vcmp.eq.s32.totalorder %v3517_v39, %v3571_v44 }
 0x14e   : > { %2630 = vmatpush1.bf16.msk.msra.mxu0 %vm2629_vm4, %v2936_v12  ;;  %vm2693_vm7 = vmpackc.low %vm758_vm0, %vm750_vm15 }
 0x14f   : > { %2694 = vmatpush1.bf16.msk.msra.mxu1 %vm2693_vm7, %v2936_v12  ;;  %vm2631_vm10 = vmpackc.low %vm773_vm3, %vm765_vm2 }
 0x150   : > { %2632 = vmatprep.subr.msk.bf16.mxu0 %vm2631_vm10, %v2936_v12  ;;  %vm2695_vm13 = vmpackc.low %vm775_vm6, %vm767_vm5 }
 0x151   : > { %2696 = vmatprep.subr.msk.bf16.mxu1 %vm2695_vm13, %v2936_v12  ;;  %vm2633_vm14 = vmpackc.low %vm772_vm9, %vm764_vm8 }
 0x152   : > { %2634 = vmatpush1.bf16.msk.msra.mxu0 %vm2633_vm14, %v2936_v12  ;;  %vm2697_vm15 = vmpackc.low %vm774_vm12, %vm766_vm11 }
 0x153   : > { %2698 = vmatpush1.bf16.msk.msra.mxu1 %vm2697_vm15, %v2936_v12 }
 0x155   : > { %1539 = vmatmul.mubr.f32.vlgmr.msra.gmra.mrb[8].mxu0 %v3577_v45 }
 0x156   : > { %1628 = vmatmul.mubr.f32.vlgmr.msra.gmra.mrb[8].mxu1 %v3577_v45  ;;  %1544 = vmatprep.mubr.f32.mxu0 %v3594_v46 }
 0x157   : > { %1633 = vmatprep.mubr.f32.mxu1 %v3594_v46 }
 0x159   : > { %1545 = vmatmul.mubr.f32.gmra.mrb[10].mxu0 %v3614_v47 }
 0x15a   : > { %1634 = vmatmul.mubr.f32.gmra.mrb[10].mxu1 %v3614_v47  ;;  %1550 = vmatprep.mubr.f32.mxu0 %v3635_v48 }
 0x15b   : > { %1639 = vmatprep.mubr.f32.mxu1 %v3635_v48 }
 0x15d   : > { %1551 = vmatmul.mubr.f32.gmra.mrb[12].mxu0 %v3656_v49 }
 0x15e   : > { %1640 = vmatmul.mubr.f32.gmra.mrb[12].mxu1 %v3656_v49  ;;  %1556 = vmatprep.mubr.f32.mxu0 %v3680_v50 }
 0x15f   : > { %1645 = vmatprep.mubr.f32.mxu1 %v3680_v50 }
 0x161   : > { %1557 = vmatmul.mubr.f32.gmra.mrb[14].mxu0 %v3704_v51 }
 0x162   : > { %1646 = vmatmul.mubr.f32.gmra.mrb[14].mxu1 %v3704_v51 }
 0x1e8   : > { %v3987_v52 = vpop.f32.mrb[0].mxu0 }
 0x1e9   : > { %v3989_v53 = vpop.f32.mrb[0].mxu1  ;;  %v3991_v54 = vpop.f32.mrb[1].mxu0  ;;  %1656 = vst [vmem:[%s3086_s19] sm:$0xff] (!%p2435_p5), %v3987_v52 }
 0x1ea   : > { %v3993_v55 = vpop.f32.mrb[1].mxu1  ;;  %1657 = vst [vmem:[%s3086_s19 + $0x8] sm:$0xff] (!%p2435_p5), %v3991_v54  ;;  %1658 = vst [vmem:[%s3086_s19 + $0x10] sm:$0xff] (!%p2435_p5), %v3989_v53 }
 0x1eb   : > { %1659 = vst [vmem:[%s3086_s19 + $0x18] sm:$0xff] (!%p2435_p5), %v3993_v55 }
 0x1ec   : > { %v3995_v56 = vpop.f32.mrb[2].mxu0 }
 0x1ed   : > { %v3997_v57 = vpop.f32.mrb[2].mxu1  ;;  %v3999_v58 = vpop.f32.mrb[3].mxu0  ;;  %1664 = vst [vmem:[%s3086_s19 + $0x40] sm:$0xff] (!%p2435_p5), %v3995_v56 }
 0x1ee   : > { %v4001_v59 = vpop.f32.mrb[3].mxu1  ;;  %1665 = vst [vmem:[%s3086_s19 + $0x48] sm:$0xff] (!%p2435_p5), %v3999_v58  ;;  %1666 = vst [vmem:[%s3086_s19 + $0x50] sm:$0xff] (!%p2435_p5), %v3997_v57 }
 0x1ef   : > { %1667 = vst [vmem:[%s3086_s19 + $0x58] sm:$0xff] (!%p2435_p5), %v4001_v59 }
 0x1f0   : > { %v4003_v60 = vpop.f32.mrb[4].mxu0 }
 0x1f1   : > { %v4005_v61 = vpop.f32.mrb[4].mxu1  ;;  %v4007_v62 = vpop.f32.mrb[5].mxu0  ;;  %1672 = vst [vmem:[%s3086_s19 + $0x80] sm:$0xff] (!%p2435_p5), %v4003_v60 }
 0x1f2   : > { %v4009_v63 = vpop.f32.mrb[5].mxu1  ;;  %1673 = vst [vmem:[%s3086_s19 + $0x88] sm:$0xff] (!%p2435_p5), %v4007_v62  ;;  %1674 = vst [vmem:[%s3086_s19 + $0x90] sm:$0xff] (!%p2435_p5), %v4005_v61 }
 0x1f3   : > { %1675 = vst [vmem:[%s3086_s19 + $0x98] sm:$0xff] (!%p2435_p5), %v4009_v63 }
 0x1f4   : > { %v4011_v0 = vpop.f32.mrb[6].mxu0 }
 0x1f5   : > { %v4013_v1 = vpop.f32.mrb[6].mxu1  ;;  %v4015_v2 = vpop.f32.mrb[7].mxu0  ;;  %1680 = vst [vmem:[%s3086_s19 + $0xc0] sm:$0xff] (!%p2435_p5), %v4011_v0 }
 0x1f6   : > { %v4017_v4 = vpop.f32.mrb[7].mxu1  ;;  %1681 = vst [vmem:[%s3086_s19 + $0xc8] sm:$0xff] (!%p2435_p5), %v4015_v2  ;;  %1682 = vst [vmem:[%s3086_s19 + $0xd0] sm:$0xff] (!%p2435_p5), %v4013_v1 }
 0x1f7   : > { %1683 = vst [vmem:[%s3086_s19 + $0xd8] sm:$0xff] (!%p2435_p5), %v4017_v4 }
 0x228   : > { %v4019_v5 = vpop.f32.mrb[8].mxu0 }
 0x229   : > { %v4021_v6 = vpop.f32.mrb[8].mxu1  ;;  %v1542_v7 = vpop.f32.mrb[9].mxu0  ;;  %1660 = vst [vmem:[%s3086_s19 + $0x20] sm:$0xff] (!%p2435_p5), %v4019_v5 }
 0x22a   : > { %v4023_v8 = vpop.f32.mrb[9].mxu1  ;;  %1661 = vst [vmem:[%s3086_s19 + $0x28] sm:$0xff] (!%p2435_p5), %v1542_v7  ;;  %1662 = vst [vmem:[%s3086_s19 + $0x30] sm:$0xff] (!%p2435_p5), %v4021_v6 }
 0x22b   : > { %1663 = vst [vmem:[%s3086_s19 + $0x38] sm:$0xff] (!%p2435_p5), %v4023_v8 }
 0x22c   : > { %v4025_v3 = vpop.f32.mrb[10].mxu0 }
 0x22d   : > { %v4027_v9 = vpop.f32.mrb[10].mxu1  ;;  %v4029_v10 = vpop.f32.mrb[11].mxu0  ;;  %1668 = vst [vmem:[%s3086_s19 + $0x60] sm:$0xff] (!%p2435_p5), %v4025_v3 }
 0x22e   : > { %v4031_v11 = vpop.f32.mrb[11].mxu1  ;;  %1669 = vst [vmem:[%s3086_s19 + $0x68] sm:$0xff] (!%p2435_p5), %v4029_v10  ;;  %1670 = vst [vmem:[%s3086_s19 + $0x70] sm:$0xff] (!%p2435_p5), %v4027_v9 }
 0x22f   : > { %1671 = vst [vmem:[%s3086_s19 + $0x78] sm:$0xff] (!%p2435_p5), %v4031_v11 }
 0x230   : > { %v4033_v12 = vpop.f32.mrb[12].mxu0  ;;  %1655 = sbr.rel (%p2435_p5) target bundleno = 568 (0x238), region = 36 }
 0x231   : > { %v4035_v13 = vpop.f32.mrb[12].mxu1  ;;  %v4037_v14 = vpop.f32.mrb[13].mxu0  ;;  %1676 = vst [vmem:[%s3086_s19 + $0xa0] sm:$0xff] (!%p2435_p5), %v4033_v12 }
 0x232   : > { %v4039_v15 = vpop.f32.mrb[13].mxu1  ;;  %1677 = vst [vmem:[%s3086_s19 + $0xa8] sm:$0xff] (!%p2435_p5), %v4037_v14  ;;  %1678 = vst [vmem:[%s3086_s19 + $0xb0] sm:$0xff] (!%p2435_p5), %v4035_v13 }
 0x233   : > { %1679 = vst [vmem:[%s3086_s19 + $0xb8] sm:$0xff] (!%p2435_p5), %v4039_v15 }
 0x234   : > { %v4041_v16 = vpop.f32.mrb[14].mxu0 }
 0x235   : > { %v4043_v17 = vpop.f32.mrb[14].mxu1  ;;  %v4045_v18 = vpop.f32.mrb[15].mxu0  ;;  %1684 = vst [vmem:[%s3086_s19 + $0xe0] sm:$0xff] (!%p2435_p5), %v4041_v16 }
 0x236   : > { %v4047_v19 = vpop.f32.mrb[15].mxu1  ;;  %1685 = vst [vmem:[%s3086_s19 + $0xe8] sm:$0xff] (!%p2435_p5), %v4045_v18  ;;  %1686 = vst [vmem:[%s3086_s19 + $0xf0] sm:$0xff] (!%p2435_p5), %v4043_v17 }
 0x237   : > { %1687 = vst [vmem:[%s3086_s19 + $0xf8] sm:$0xff] %v4047_v19 }
 0x238 PF: > { %p2436_p6 = scmp.le.s32.totalorder %s2907_s26, 0 }
 0x239   : > { %v1692_v20 = vld [vmem:[%s3086_s19] sm:$0xff] (!%p2436_p6)  ;;  %v1693_v21 = vld [vmem:[%s3086_s19 + $0x8] sm:$0xff] (!%p2436_p6)  ;;  %v1694_v22 = vld [vmem:[%s3086_s19 + $0x10] sm:$0xff] (!%p2436_p6) }
 0x23a   : > { %1691 = sbr.rel (%p2436_p6) target bundleno = 588 (0x24c), region = 40  ;;  %v1724_v23 = vadd.f32 (!%p2436_p6), %v1692_v20, %v3987_v52  ;;  %v1725_v24 = vadd.f32 (!%p2436_p6), %v1693_v21, %v3991_v54  ;;  %v1726_v25 = vadd.f32 (!%p2436_p6), %v1694_v22, %v3989_v53  ;;  %v1695_v26 = vld [vmem:[%s3086_s19 + $0x18] sm:$0xff] (!%p2436_p6)  ;;  %v1696_v27 = vld [vmem:[%s3086_s19 + $0x20] sm:$0xff] (!%p2436_p6)  ;;  %v1697_v28 = vld [vmem:[%s3086_s19 + $0x28] sm:$0xff] (!%p2436_p6) }
 0x23b   : > { %v1727_v29 = vadd.f32 (!%p2436_p6), %v1695_v26, %v3993_v55  ;;  %v1728_v30 = vadd.f32 (!%p2436_p6), %v1696_v27, %v4019_v5  ;;  %v1729_v31 = vadd.f32 (!%p2436_p6), %v1697_v28, %v1542_v7  ;;  %v1698_v32 = vld [vmem:[%s3086_s19 + $0x30] sm:$0xff] (!%p2436_p6)  ;;  %v1699_v33 = vld [vmem:[%s3086_s19 + $0x38] sm:$0xff] (!%p2436_p6)  ;;  %v1700_v34 = vld [vmem:[%s3086_s19 + $0x40] sm:$0xff] (!%p2436_p6) }
 0x23c   : > { %1756 = vst [vmem:[%s3086_s19] sm:$0xff] (!%p2436_p6), %v1724_v23  ;;  %1757 = vst [vmem:[%s3086_s19 + $0x8] sm:$0xff] (!%p2436_p6), %v1725_v24  ;;  %v1730_v35 = vadd.f32 (!%p2436_p6), %v1698_v32, %v4021_v6  ;;  %v1731_v36 = vadd.f32 (!%p2436_p6), %v1699_v33, %v4023_v8  ;;  %v1732_v37 = vadd.f32 (!%p2436_p6), %v1700_v34, %v3995_v56  ;;  %v1701_v38 = vld [vmem:[%s3086_s19 + $0x48] sm:$0xff] (!%p2436_p6)  ;;  %v1702_v39 = vld [vmem:[%s3086_s19 + $0x50] sm:$0xff] (!%p2436_p6) }
 0x23d   : > { %1758 = vst [vmem:[%s3086_s19 + $0x10] sm:$0xff] (!%p2436_p6), %v1726_v25  ;;  %v1703_v40 = vld [vmem:[%s3086_s19 + $0x58] sm:$0xff] (!%p2436_p6)  ;;  %1759 = vst [vmem:[%s3086_s19 + $0x18] sm:$0xff] (!%p2436_p6), %v1727_v29  ;;  %v1733_v41 = vadd.f32 (!%p2436_p6), %v1701_v38, %v3999_v58  ;;  %v1734_v42 = vadd.f32 (!%p2436_p6), %v1702_v39, %v3997_v57  ;;  %v1704_v44 = vld [vmem:[%s3086_s19 + $0x60] sm:$0xff] (!%p2436_p6) }
 0x23e   : > { %1760 = vst [vmem:[%s3086_s19 + $0x20] sm:$0xff] (!%p2436_p6), %v1728_v30  ;;  %1761 = vst [vmem:[%s3086_s19 + $0x28] sm:$0xff] (!%p2436_p6), %v1729_v31  ;;  %v1735_v43 = vadd.f32 (!%p2436_p6), %v1703_v40, %v4001_v59  ;;  %v1705_v45 = vld [vmem:[%s3086_s19 + $0x68] sm:$0xff] (!%p2436_p6)  ;;  %v1706_v46 = vld [vmem:[%s3086_s19 + $0x70] sm:$0xff] (!%p2436_p6)  ;;  %v1736_v47 = vadd.f32 (!%p2436_p6), %v1704_v44, %v4025_v3 }
 0x23f   : > { %1762 = vst [vmem:[%s3086_s19 + $0x30] sm:$0xff] (!%p2436_p6), %v1730_v35  ;;  %1763 = vst [vmem:[%s3086_s19 + $0x38] sm:$0xff] (!%p2436_p6), %v1731_v36  ;;  %v1737_v48 = vadd.f32 (!%p2436_p6), %v1705_v45, %v4029_v10  ;;  %v1738_v49 = vadd.f32 (!%p2436_p6), %v1706_v46, %v4027_v9  ;;  %v1707_v50 = vld [vmem:[%s3086_s19 + $0x78] sm:$0xff] (!%p2436_p6)  ;;  %v1708_v51 = vld [vmem:[%s3086_s19 + $0x80] sm:$0xff] (!%p2436_p6) }
 0x240   : > { %1764 = vst [vmem:[%s3086_s19 + $0x40] sm:$0xff] (!%p2436_p6), %v1732_v37  ;;  %v1709_v52 = vld [vmem:[%s3086_s19 + $0x88] sm:$0xff] (!%p2436_p6)  ;;  %1765 = vst [vmem:[%s3086_s19 + $0x48] sm:$0xff] (!%p2436_p6), %v1733_v41  ;;  %v1739_v53 = vadd.f32 (!%p2436_p6), %v1707_v50, %v4031_v11  ;;  %v1740_v54 = vadd.f32 (!%p2436_p6), %v1708_v51, %v4003_v60  ;;  %v1710_v56 = vld [vmem:[%s3086_s19 + $0x90] sm:$0xff] (!%p2436_p6) }
 0x241   : > { %1766 = vst [vmem:[%s3086_s19 + $0x50] sm:$0xff] %v1734_v42  ;;  %1767 = vst [vmem:[%s3086_s19 + $0x58] sm:$0xff] %v1735_v43  ;;  %v1741_v55 = vadd.f32 %v1709_v52, %v4007_v62  ;;  %v1711_v57 = vld [vmem:[%s3086_s19 + $0x98] sm:$0xff]  ;;  %v1712_v58 = vld [vmem:[%s3086_s19 + $0xa0] sm:$0xff]  ;;  %v1742_v59 = vadd.f32 %v1710_v56, %v4005_v61 }
 0x242   : > { %1768 = vst [vmem:[%s3086_s19 + $0x60] sm:$0xff] %v1736_v47  ;;  %1769 = vst [vmem:[%s3086_s19 + $0x68] sm:$0xff] %v1737_v48  ;;  %v1743_v5 = vadd.f32 %v1711_v57, %v4009_v63  ;;  %v1744_v60 = vadd.f32 %v1712_v58, %v4033_v12  ;;  %v1713_v6 = vld [vmem:[%s3086_s19 + $0xa8] sm:$0xff]  ;;  %v1714_v62 = vld [vmem:[%s3086_s19 + $0xb0] sm:$0xff] }
 0x243   : > { %1770 = vst [vmem:[%s3086_s19 + $0x70] sm:$0xff] %v1738_v49  ;;  %v1715_v7 = vld [vmem:[%s3086_s19 + $0xb8] sm:$0xff]  ;;  %1771 = vst [vmem:[%s3086_s19 + $0x78] sm:$0xff] %v1739_v53  ;;  %v1745_v8 = vadd.f32 %v1713_v6, %v4037_v14  ;;  %v1746_v61 = vadd.f32 %v1714_v62, %v4035_v13  ;;  %v1716_v3 = vld [vmem:[%s3086_s19 + $0xc0] sm:$0xff] }
 0x244   : > { %1772 = vst [vmem:[%s3086_s19 + $0x80] sm:$0xff] %v1740_v54  ;;  %1773 = vst [vmem:[%s3086_s19 + $0x88] sm:$0xff] %v1741_v55  ;;  %v1747_v63 = vadd.f32 %v1715_v7, %v4039_v15  ;;  %v1717_v9 = vld [vmem:[%s3086_s19 + $0xc8] sm:$0xff]  ;;  %v1718_v10 = vld [vmem:[%s3086_s19 + $0xd0] sm:$0xff]  ;;  %v1748_v11 = vadd.f32 %v1716_v3, %v4011_v0 }
 0x245   : > { %1774 = vst [vmem:[%s3086_s19 + $0x90] sm:$0xff] %v1742_v59  ;;  %1775 = vst [vmem:[%s3086_s19 + $0x98] sm:$0xff] %v1743_v5  ;;  %v1749_v12 = vadd.f32 %v1717_v9, %v4015_v2  ;;  %v1750_v13 = vadd.f32 %v1718_v10, %v4013_v1  ;;  %v1719_v14 = vld [vmem:[%s3086_s19 + $0xd8] sm:$0xff]  ;;  %v1720_v15 = vld [vmem:[%s3086_s19 + $0xe0] sm:$0xff] }
 0x246   : > { %1776 = vst [vmem:[%s3086_s19 + $0xa0] sm:$0xff] %v1744_v60  ;;  %v1721_v20 = vld [vmem:[%s3086_s19 + $0xe8] sm:$0xff]  ;;  %1777 = vst [vmem:[%s3086_s19 + $0xa8] sm:$0xff] %v1745_v8  ;;  %v1751_v21 = vadd.f32 %v1719_v14, %v4017_v4  ;;  %v1752_v0 = vadd.f32 %v1720_v15, %v4041_v16  ;;  %v1722_v2 = vld [vmem:[%s3086_s19 + $0xf0] sm:$0xff] }
 0x247   : > { %1778 = vst [vmem:[%s3086_s19 + $0xb0] sm:$0xff] %v1746_v61  ;;  %1779 = vst [vmem:[%s3086_s19 + $0xb8] sm:$0xff] %v1747_v63  ;;  %v1753_v22 = vadd.f32 %v1721_v20, %v4045_v18  ;;  %v1723_v23 = vld [vmem:[%s3086_s19 + $0xf8] sm:$0xff]  ;;  %v1754_v1 = vadd.f32 %v1722_v2, %v4043_v17 }
 0x248   : > { %1780 = vst [vmem:[%s3086_s19 + $0xc0] sm:$0xff] %v1748_v11  ;;  %1781 = vst [vmem:[%s3086_s19 + $0xc8] sm:$0xff] %v1749_v12  ;;  %v1755_v24 = vadd.f32 %v1723_v23, %v4047_v19 }
 0x249   : > { %1782 = vst [vmem:[%s3086_s19 + $0xd0] sm:$0xff] %v1750_v13  ;;  %1783 = vst [vmem:[%s3086_s19 + $0xd8] sm:$0xff] %v1751_v21 }
 0x24a   : > { %1784 = vst [vmem:[%s3086_s19 + $0xe0] sm:$0xff] %v1752_v0  ;;  %1785 = vst [vmem:[%s3086_s19 + $0xe8] sm:$0xff] %v1753_v22 }
 0x24b   : > { %1786 = vst [vmem:[%s3086_s19 + $0xf0] sm:$0xff] %v1754_v1  ;;  %1787 = vst [vmem:[%s3086_s19 + $0xf8] sm:$0xff] %v1755_v24 }
 0x24c PF: > { %s2438_s26 = sshll.u32 %s2911_s27, 3  ;;  %s2439_s29 = sshll.u32 %s2915_s28, 6 }
 0x24d   : > { %s1804_s30 = sshll.u32 %s3086_s19, 4  ;;  %s1801_s9 = sadd.s32 %s2439_s29, %s2438_s26  ;;  %s4212_s30 = int_to_ptr.vmem [resolvable:$true] %s1804_s30 }
 0x24e   : > { %s2440_s10 = sshll.u32 %s1801_s9, 7  ;;  %s4299_s22 = sand.u32 1, %s2899_s24  }
 0x24f   : > { %s4217_s21 = scalar_lea.hbm %s4282_s4, %s2440_s10  ;;  %s4221_s7 = scalar_lea.sflag [#allocation6], %s4299_s22 }
 0x250   : > { %s2819_s14 = scalar_lea.vmem %s4212_s30, 4096  ;;  %s2937_s27 = smov [#allocation5]  }
 0x251   : > { %p2820_p7 = scmp.ne.s32.totalorder %s4212_s30, %s2819_s14  ;;  %s2823_s28 = sshll.u32 %s2937_s27, 4  ;;  %s2824_s28 = int_to_ptr.vmem [resolvable:$false] %s2823_s28 }
 0x252   : > { %s2825_s16 = scalar_lea.vmem %s2824_s28, 8192  ;;  %p2826_p10 = scmp.lt.s32.totalorder %s4212_s30, %s2824_s28 }
 0x253   : > { %p2821_p8 = pnand %p2820_p7, %p3034_p2  ;;  %p2827_p11 = scmp.lt.s32.totalorder %s2825_s16, %s2819_s14 }
 0x255   : > { %p2822_p9 = pneg %p2821_p8  ;;  %p2828_p12 = por %p2827_p11, %p2826_p10 }
 0x257   : > { %p2829_p13 = pnand %p2828_p12, %p2822_p9 }
 0x259   : > { %2832 = shalt.err (!%p2829_p13)
}
 0x25a   : > { %s2833_s17 = scalar_lea.hbm %s4217_s21, 4096  ;;  %s2837_s0 = scalar_lea.hbm %s4282_s4, 16384 }
 0x25b   : > { %p2834_p0 = scmp.ne.s32.totalorder %s4217_s21, %s2833_s17  ;;  %p2838_p5 = scmp.lt.u32.totalorder %s4217_s21, %s4282_s4 }
 0x25c   : > { %p2839_p6 = scmp.lt.u32.totalorder %s2837_s0, %s2833_s17  ;;  %p2841_p8 = scmp.lt.u32.totalorder %s2833_s17, %s4217_s21 }
 0x25d   : > { %p2835_p1 = pnand %p2834_p0, %p3034_p2 }
 0x25e   : > { %p2840_p7 = por %p2839_p6, %p2838_p5 }
 0x25f   : > { %p2836_p4 = pneg %p2835_p1 }
 0x260   : > { %p2842_p9 = por %p2841_p8, %p2840_p7 }
 0x262   : > { %p2843_p10 = pnand %p2842_p9, %p2836_p4 }
 0x264   : > { %2846 = shalt.err (!%p2843_p10)
}
 0x265   : > { %s2938_s19 = smov 1024   ;;  %s2939_s5 = smov 2048  }
 0x266   : > { %s2940_s26 = smov 64  }
 0x267   : > { %2699 = dma.vmem_to_hbm [thread:$0]  (%p3034_p2), %s4212_s30, 4096, %s4217_s21, %s4221_s7, %s2938_s19, %s2939_s5, %s2940_s26  }
 0x268 PF: > { %p2705_p11 = scmp.ge.s32.totalorder %s2931_s6, 2  ;;  %s1819_s29 = sand.u32 1, %s2895_s1  }
 0x269   : > { %s1820_s9 = scalar_lea.sflag [#allocation6], %s1819_s29 }
 0x26a   : > { %p2702_p12 = pnand %p2705_p11, %p3041_p3 }
 0x26c   : > { %2890 = dma.done.wait (!%p2702_p12), %s1820_s9, 4096  }
 0x26d   : > { %2892 = vsyncadd (!%p2702_p12), %s1820_s9, 4294963200  ;;  %s27_s6 = sadd.s32 1, %s2931_s6   ;;  %s4300_s10 = sld [smem:[#allocation15_spill]] }
 0x26e   : > { %p24_p13 = scmp.ge.s32.totalorder %s27_s6, 22   ;;  %s4301_s26 = sld [smem:[#allocation9_spill]] }
 0x26f   : > { %s4302_s27 = sld [smem:[#allocation10_spill]]  ;;  %s4303_s28 = sld [smem:[#allocation11_spill]] }
 0x270   : > { %s4304_s29 = sld [smem:[#allocation12_spill]]  ;;  %s4305_s30 = sld [smem:[#allocation13_spill]] }
 0x271   : > { %s4306_s5 = sld [smem:[#allocation14_spill]]  ;;  %s4307_s1 = smov %s2899_s24 }
 0x272   : > { %s4308_s24 = smov %s2903_s25  ;;  %26 = sbr.rel (!%p24_p13) target bundleno = 31 (0x1f), region = 78 }
 0x273   : > { %s4309_s25 = smov %s4300_s10 }
 0x279   :  { %1825 = vsyncpa [#allocation6], 1 }
 0x27a   :  { %1827 = vsyncpa [#allocation6 + $0x1], 1 }

</bundles_post_ra>
